<compile_context>
chip_gen: v7x
topology: tpu7x:2x2x1
jax: 0.10.0
libtpu: 0.0.40
codegen_flags: <defaults>
</compile_context>

<pallas_src>
from functools import partial

import jax
import jax.numpy as jnp
from jax.experimental import pallas as pl
from jax.experimental.pallas import tpu as pltpu

PACK = 16  # logical rows packed per 128-lane row (input_dim 8 * 16 = 128)


def mlp2_kernel(alpha_ref, u_ref, w1_ref, b1_ref, w2_ref, b2_ref, w3_ref, b3_ref,
                o_ref, *, approx_sigmoid=False):
    """Lane-dense MLP2 forward for one packed batch tile.

    u_ref is (tb, 128): 16 logical rows of width 8 packed per 128-lane row.
    Weights are block-diagonal (16 copies of the original), so each 8-lane
    segment runs the original MLP independently and all three matmuls plus the
    output store stay lane-dense.  alpha = softplus(beta) is precomputed
    (SMEM); the 1/1.1 swish scale is folded into w2/w3 by prepare_params.
    """
    x = u_ref[...].astype(jnp.float32)
    a1 = alpha_ref[0]
    a2 = alpha_ref[1]

    def swish_core(z, a):
        if approx_sigmoid:
            # EUP-only path (exp + approx reciprocal) - keeps VALU slots free.
            return z * pl.reciprocal(1.0 + jnp.exp(-z * a), approx=True)
        return z * jax.nn.sigmoid(z * a)

    # layer 1: Linear(128 -> 512 packed) + Swish (scale folded into w2)
    h = jnp.dot(x, w1_ref[...], preferred_element_type=jnp.float32) + b1_ref[...]
    h = swish_core(h, a1)
    # layer 2: Linear(512 -> 512 packed) + Swish (scale folded into w3)
    h = jnp.dot(h, w2_ref[...], preferred_element_type=jnp.float32) + b2_ref[...]
    h = swish_core(h, a2)
    # layer 3: Linear(512 -> 128 packed)
    out = jnp.dot(h, w3_ref[...], preferred_element_type=jnp.float32) + b3_ref[...]
    o_ref[...] = out.astype(o_ref.dtype)


def _vmem_limit_bytes():
    """Per-generation VMEM limit: ~38 MiB on v7x (64 MiB physical),
    ~76 MiB on v5e/v6e (128 MiB), 32 MiB safe fallback."""
    try:
        cap = int(getattr(pltpu.get_tpu_info(), "vmem_capacity_bytes"))
    except Exception:
        return 32 * 1024 * 1024
    return max(32 * 1024 * 1024, min(int(cap * 0.6), 96 * 1024 * 1024))


def prepare_params(params, pack=PACK):
    """One-time preprocessing - hoist this OUT of the ODE time-step loop.

    * softplus(beta) -> alphas (2,) f32 (lives in SMEM in the kernel)
    * swish 1/1.1 folded into w2/w3 (exact: (x/1.1) @ W == x @ (W/1.1))
    * block-diagonal replication (`pack` copies) so kernel I/O and matmuls are
      lane-dense: w1 (8,32)->(128,512), w2 (32,32)->(512,512),
      w3 (32,8)->(512,128); biases tiled to match.
    """
    w1, b1, w2, b2, w3, b3, beta1, beta2 = params
    inv = jnp.float32(1.0 / 1.1)
    eye = jnp.eye(pack, dtype=jnp.float32)
    w1_bd = jnp.kron(eye, w1.astype(jnp.float32))           # (pack*D, pack*H)
    w2_bd = jnp.kron(eye, (w2 * inv).astype(jnp.float32))   # (pack*H, pack*H)
    w3_bd = jnp.kron(eye, (w3 * inv).astype(jnp.float32))   # (pack*H, pack*D)
    b1_bd = jnp.tile(b1.astype(jnp.float32), (1, pack))     # (1, pack*H)
    b2_bd = jnp.tile(b2.astype(jnp.float32), (1, pack))     # (1, pack*H)
    b3_bd = jnp.tile(b3.astype(jnp.float32), (1, pack))     # (1, pack*D)
    alphas = jnp.stack([jax.nn.softplus(beta1.reshape(())),
                        jax.nn.softplus(beta2.reshape(()))]).astype(jnp.float32)
    return (alphas, w1_bd, b1_bd, w2_bd, b2_bd, w3_bd, b3_bd)


def derivative_forward(t, u, prepared, *, batch_tile_packed=None,
                       approx_sigmoid=False):
    """Derivative.forward(t, u) -> net(u).  `t` is ignored (as in the module).

    `prepared` = prepare_params(raw_params), computed once per solve.
    `u` may be float32 or bfloat16 (bf16 halves HBM traffic; compute is f32).
    """
    del t  # Derivative ignores t
    alphas, w1, b1, w2, b2, w3, b3 = prepared
    B, D = u.shape
    Dp, Hp = w1.shape                 # packed widths (pack*D, pack*H)
    pack = Dp // D

    # ---- lane-dense packing: (B, D) -> (P, pack*D), free row-major reshape ----
    # Minimal pad (<= pack-1 rows) only when B % pack != 0; the per-tile pad of
    # the previous version is gone (partial edge blocks handle ragged grids).
    B_pk = ((B + pack - 1) // pack) * pack
    u_in = u if B_pk == B else jnp.pad(u, ((0, B_pk - B), (0, 0)))
    P = B_pk // pack
    u_packed = u_in.reshape(P, Dp)

    # ---- tile selection: physical-VMEM aware (buffers are lane-dense now) ----
    vmem_limit = _vmem_limit_bytes()
    weight_bytes = 4 * (Dp * Hp + Hp * Hp + Hp * Dp + 2 * Hp + Dp)   # ~1.5 MiB
    # double-buffered in/out tiles + two hidden-width temporaries + out temp
    per_row_bytes = 4 * (2 * 2 * Dp + 2 * Hp + Dp)
    budget = vmem_limit - 2 * weight_bytes - (4 << 20)               # headroom
    max_rows = max(8, (budget // per_row_bytes) // 8 * 8)

    tb = 2048 if batch_tile_packed is None else int(batch_tile_packed)
    if P <= 8:
        tb = P                       # block == full (small) array dim -> allowed
    else:
        tb = min(tb, max_rows)
        tb = min(tb, -(-P // 2))     # >= 2 grid steps: feeds both v7x TensorCores
        tb = max(8, (tb // 8) * 8)
        tb = min(tb, (P // 8) * 8)   # keep multiple-of-8, don't exceed array
    grid_b = pl.cdiv(P, tb)

    cost = pl.CostEstimate(
        flops=2 * P * (Dp * Hp + Hp * Hp + Hp * Dp),
        transcendentals=2 * P * Hp,
        bytes_accessed=4 * 2 * P * Dp + weight_bytes,
    )

    full = lambda shape: pl.BlockSpec(shape, lambda i: (0, 0))
    kernel = partial(mlp2_kernel, approx_sigmoid=approx_sigmoid)

    out_packed = pl.pallas_call(
        kernel,
        out_shape=jax.ShapeDtypeStruct((P, Dp), u.dtype),
        grid_spec=pltpu.PrefetchScalarGridSpec(
            num_scalar_prefetch=0,
            grid=(grid_b,),
            in_specs=[
                pl.BlockSpec(memory_space=pltpu.MemorySpace.SMEM),  # alphas (2,)
                pl.BlockSpec((tb, Dp), lambda i: (i, 0)),           # packed u tile
                full((Dp, Hp)),                                     # w1 block-diag
                full((1, Hp)),                                      # b1
                full((Hp, Hp)),                                     # w2 (pre-scaled)
                full((1, Hp)),                                      # b2
                full((Hp, Dp)),                                     # w3 (pre-scaled)
                full((1, Dp)),                                      # b3
            ],
            out_specs=pl.BlockSpec((tb, Dp), lambda i: (i, 0)),
        ),
        compiler_params=pltpu.CompilerParams(
            dimension_semantics=("parallel",),   # batch tiles independent
            vmem_limit_bytes=vmem_limit,
        ),
        cost_estimate=cost,
    )(alphas, u_packed, w1, b1, w2, b2, w3, b3)

    out = out_packed.reshape(B_pk, D)
    return out if B_pk == B else out[:B]


def init_params(key, input_dim, hidden):
    """Deterministic synthetic init matching the torch module's shapes.
    Weights stored as [in, out] (transposed vs. torch's [out, in])."""
    ks = jax.random.split(key, 6)
    s1 = 1.0 / jnp.sqrt(input_dim)
    s2 = 1.0 / jnp.sqrt(hidden)
    w1 = jax.random.uniform(ks[0], (input_dim, hidden), jnp.float32, -s1, s1)
    b1 = jax.random.uniform(ks[1], (1, hidden), jnp.float32, -s1, s1)
    w2 = jax.random.uniform(ks[2], (hidden, hidden), jnp.float32, -s2, s2)
    b2 = jax.random.uniform(ks[3], (1, hidden), jnp.float32, -s2, s2)
    w3 = jax.random.uniform(ks[4], (hidden, input_dim), jnp.float32, -s2, s2)
    b3 = jax.random.uniform(ks[5], (1, input_dim), jnp.float32, -s2, s2)
    beta1 = jnp.full((1, 1), 0.5, jnp.float32)   # Swish beta init = 0.5
    beta2 = jnp.full((1, 1), 0.5, jnp.float32)
    return (w1, b1, w2, b2, w3, b3, beta1, beta2)


def reference_forward(u, params):
    """Pure-JAX reference matching the torch module semantics exactly
    (matmuls at HIGHEST precision so the reference itself is true f32)."""
    w1, b1, w2, b2, w3, b3, beta1, beta2 = params
    hp = jax.lax.Precision.HIGHEST

    def swish(x, beta):
        return (x * jax.nn.sigmoid(x * jax.nn.softplus(beta))) / 1.1

    h = swish(jnp.dot(u, w1, precision=hp) + b1, beta1[0, 0])
    h = swish(jnp.dot(h, w2, precision=hp) + b2, beta2[0, 0])
    return jnp.dot(h, w3, precision=hp) + b3


if __name__ == "__main__":
    # Shapes consistent with the module: state_c=2, code_c=4 -> input_dim=8
    state_c, code_c, hidden_c = 2, 4, 32
    input_dim = code_c * state_c

    key = jax.random.PRNGKey(0)
    k_u, k_p, k_u2 = jax.random.split(key, 3)
    params = init_params(k_p, input_dim, hidden_c)
    prepared = prepare_params(params)        # hoisted: once per ODE solve
    t = jnp.float32(0.0)                     # ignored by Derivative.forward

    # Loose-ish tolerance only to be robust across matmul-precision defaults
    # (XLA default vs MXU multi-pass f32); typical observed error is ~1e-6.
    tol = dict(atol=1e-2, rtol=1e-2)

    # Small batch: 8 rows -> padded to 16 -> one packed (1, 128) row.
    u = jax.random.normal(k_u, (8, input_dim), jnp.float32)
    out = jax.block_until_ready(derivative_forward(t, u, prepared))
    ref = reference_forward(u, params)
    assert out.shape == u.shape
    assert jnp.allclose(out, ref, **tol), "mismatch (small batch)"

    # Ragged multi-tile batch: 200 rows -> 13 packed rows, grid of 2 with a
    # partial edge block (exercises masked edge stores, no per-tile padding).
    u2 = jax.random.normal(k_u2, (200, input_dim), jnp.float32)
    out2 = jax.block_until_ready(derivative_forward(t, u2, prepared))
    ref2 = reference_forward(u2, params)
    assert out2.shape == u2.shape
    assert jnp.allclose(out2, ref2, **tol), "mismatch (ragged batch)"

    print("KERNEL_OK")
</pallas_src>

<mosaic_0001>
module attributes {stable_mosaic.version = 11 : i64} {
  func.func @mlp2_kernel(%arg0: i32, %arg1: memref<2xf32, #tpu.memory_space<smem>>, %arg2: memref<1x128xf32, #tpu.memory_space<vmem>>, %arg3: memref<128x512xf32, #tpu.memory_space<vmem>>, %arg4: memref<1x512xf32, #tpu.memory_space<vmem>>, %arg5: memref<512x512xf32, #tpu.memory_space<vmem>>, %arg6: memref<1x512xf32, #tpu.memory_space<vmem>>, %arg7: memref<512x128xf32, #tpu.memory_space<vmem>>, %arg8: memref<1x128xf32, #tpu.memory_space<vmem>>, %arg9: memref<1x128xf32, #tpu.memory_space<vmem>>) attributes {dimension_semantics = [#tpu.dimension_semantics<parallel>], iteration_bounds = array<i64: 1>, scalar_prefetch = 0 : i64, scratch_operands = 0 : i64, tpu.core_type = #tpu.core_type<tc>, window_params = [{transform_indices = @transform_0, window_bounds = array<i64: 2>}, {transform_indices = @transform_1, window_bounds = array<i64: 1, 128>}, {pipeline_mode = #tpu.pipeline_mode<synchronous>, transform_indices = @transform_2, window_bounds = array<i64: 128, 512>}, {pipeline_mode = #tpu.pipeline_mode<synchronous>, transform_indices = @transform_3, window_bounds = array<i64: 1, 512>}, {pipeline_mode = #tpu.pipeline_mode<synchronous>, transform_indices = @transform_4, window_bounds = array<i64: 512, 512>}, {pipeline_mode = #tpu.pipeline_mode<synchronous>, transform_indices = @transform_5, window_bounds = array<i64: 1, 512>}, {pipeline_mode = #tpu.pipeline_mode<synchronous>, transform_indices = @transform_6, window_bounds = array<i64: 512, 128>}, {pipeline_mode = #tpu.pipeline_mode<synchronous>, transform_indices = @transform_7, window_bounds = array<i64: 1, 128>}, {transform_indices = @transform_8, window_bounds = array<i64: 1, 128>}]} {
    %c0 = arith.constant 0 : index
    %c0_0 = arith.constant 0 : index
    %0 = vector.load %arg2[%c0, %c0_0] : memref<1x128xf32, #tpu.memory_space<vmem>>, vector<1x128xf32>
    %c0_1 = arith.constant 0 : index
    %1 = memref.load %arg1[%c0_1] : memref<2xf32, #tpu.memory_space<smem>>
    %c1 = arith.constant 1 : index
    %2 = memref.load %arg1[%c1] : memref<2xf32, #tpu.memory_space<smem>>
    %c0_2 = arith.constant 0 : index
    %c0_3 = arith.constant 0 : index
    %3 = vector.load %arg3[%c0_2, %c0_3] : memref<128x512xf32, #tpu.memory_space<vmem>>, vector<128x512xf32>
    %cst = arith.constant dense<0.000000e+00> : vector<1x512xf32>
    %4 = tpu.matmul %0, %3, %cst {dimension_numbers = #tpu.dot_dimension_numbers<[1], [0], [0], [1], [0, 0, 1, 1], [], []>} : vector<1x128xf32>, vector<128x512xf32>, vector<1x512xf32> -> vector<1x512xf32>
    %c0_4 = arith.constant 0 : index
    %c0_5 = arith.constant 0 : index
    %5 = vector.load %arg4[%c0_4, %c0_5] : memref<1x512xf32, #tpu.memory_space<vmem>>, vector<1x512xf32>
    %6 = arith.addf %4, %5 : vector<1x512xf32>
    %7 = vector.broadcast %1 : f32 to vector<1x512xf32>
    %8 = arith.mulf %6, %7 : vector<1x512xf32>
    %9 = arith.negf %8 : vector<1x512xf32>
    %10 = math.exp %9 : vector<1x512xf32>
    %cst_6 = arith.constant 1.000000e+00 : f32
    %11 = vector.broadcast %cst_6 : f32 to vector<1x512xf32>
    %12 = arith.addf %11, %10 : vector<1x512xf32>
    %13 = arith.divf %11, %12 : vector<1x512xf32>
    %14 = arith.mulf %6, %13 : vector<1x512xf32>
    %c0_7 = arith.constant 0 : index
    %c0_8 = arith.constant 0 : index
    %15 = vector.load %arg5[%c0_7, %c0_8] : memref<512x512xf32, #tpu.memory_space<vmem>>, vector<512x512xf32>
    %cst_9 = arith.constant dense<0.000000e+00> : vector<1x512xf32>
    %16 = tpu.matmul %14, %15, %cst_9 {dimension_numbers = #tpu.dot_dimension_numbers<[1], [0], [0], [1], [0, 0, 1, 1], [], []>} : vector<1x512xf32>, vector<512x512xf32>, vector<1x512xf32> -> vector<1x512xf32>
    %c0_10 = arith.constant 0 : index
    %c0_11 = arith.constant 0 : index
    %17 = vector.load %arg6[%c0_10, %c0_11] : memref<1x512xf32, #tpu.memory_space<vmem>>, vector<1x512xf32>
    %18 = arith.addf %16, %17 : vector<1x512xf32>
    %19 = vector.broadcast %2 : f32 to vector<1x512xf32>
    %20 = arith.mulf %18, %19 : vector<1x512xf32>
    %21 = arith.negf %20 : vector<1x512xf32>
    %22 = math.exp %21 : vector<1x512xf32>
    %cst_12 = arith.constant 1.000000e+00 : f32
    %23 = vector.broadcast %cst_12 : f32 to vector<1x512xf32>
    %24 = arith.addf %23, %22 : vector<1x512xf32>
    %25 = arith.divf %23, %24 : vector<1x512xf32>
    %26 = arith.mulf %18, %25 : vector<1x512xf32>
    %c0_13 = arith.constant 0 : index
    %c0_14 = arith.constant 0 : index
    %27 = vector.load %arg7[%c0_13, %c0_14] : memref<512x128xf32, #tpu.memory_space<vmem>>, vector<512x128xf32>
    %cst_15 = arith.constant dense<0.000000e+00> : vector<1x128xf32>
    %28 = tpu.matmul %26, %27, %cst_15 {dimension_numbers = #tpu.dot_dimension_numbers<[1], [0], [0], [1], [0, 0, 1, 1], [], []>} : vector<1x512xf32>, vector<512x128xf32>, vector<1x128xf32> -> vector<1x128xf32>
    %c0_16 = arith.constant 0 : index
    %c0_17 = arith.constant 0 : index
    %29 = vector.load %arg8[%c0_16, %c0_17] : memref<1x128xf32, #tpu.memory_space<vmem>>, vector<1x128xf32>
    %30 = arith.addf %28, %29 : vector<1x128xf32>
    %c0_18 = arith.constant 0 : index
    %c0_19 = arith.constant 0 : index
    %31 = vector.load %arg9[%c0_18, %c0_19] : memref<1x128xf32, #tpu.memory_space<vmem>>, vector<1x128xf32>
    tpu.vector_store %arg9[%c0_18, %c0_19], %30 {strides = array<i32>} : memref<1x128xf32, #tpu.memory_space<vmem>>, vector<1x128xf32>,
    return
  }
  func.func @transform_0(%arg0: i32) -> i32 {
    %c0_i32 = arith.constant 0 : i32
    %c0_i32_0 = arith.constant 0 : i32
    return %c0_i32 : i32
  }
  func.func @transform_1(%arg0: i32) -> (i32, i32) {
    %c0_i32 = arith.constant 0 : i32
    %c0_i32_0 = arith.constant 0 : i32
    return %arg0, %c0_i32 : i32, i32
  }
  func.func @transform_2(%arg0: i32) -> (i32, i32) {
    %c0_i32 = arith.constant 0 : i32
    %c0_i32_0 = arith.constant 0 : i32
    %c0_i32_1 = arith.constant 0 : i32
    return %c0_i32, %c0_i32_0 : i32, i32
  }
  func.func @transform_3(%arg0: i32) -> (i32, i32) {
    %c0_i32 = arith.constant 0 : i32
    %c0_i32_0 = arith.constant 0 : i32
    %c0_i32_1 = arith.constant 0 : i32
    return %c0_i32, %c0_i32_0 : i32, i32
  }
  func.func @transform_4(%arg0: i32) -> (i32, i32) {
    %c0_i32 = arith.constant 0 : i32
    %c0_i32_0 = arith.constant 0 : i32
    %c0_i32_1 = arith.constant 0 : i32
    return %c0_i32, %c0_i32_0 : i32, i32
  }
  func.func @transform_5(%arg0: i32) -> (i32, i32) {
    %c0_i32 = arith.constant 0 : i32
    %c0_i32_0 = arith.constant 0 : i32
    %c0_i32_1 = arith.constant 0 : i32
    return %c0_i32, %c0_i32_0 : i32, i32
  }
  func.func @transform_6(%arg0: i32) -> (i32, i32) {
    %c0_i32 = arith.constant 0 : i32
    %c0_i32_0 = arith.constant 0 : i32
    %c0_i32_1 = arith.constant 0 : i32
    return %c0_i32, %c0_i32_0 : i32, i32
  }
  func.func @transform_7(%arg0: i32) -> (i32, i32) {
    %c0_i32 = arith.constant 0 : i32
    %c0_i32_0 = arith.constant 0 : i32
    %c0_i32_1 = arith.constant 0 : i32
    return %c0_i32, %c0_i32_0 : i32, i32
  }
  func.func @transform_8(%arg0: i32) -> (i32, i32) {
    %c0_i32 = arith.constant 0 : i32
    %c0_i32_0 = arith.constant 0 : i32
    return %arg0, %c0_i32 : i32, i32
  }
}

</mosaic_0001>

<bundles_post_ra>
// kernel: tpu_custom_call.1
= control target key start
LH: loop header
LB: loop body
LE: loop exit
PB: predicated region body
PF: predicated region fallthrough
CT: control target
= control target key end

     0   :  { %13 = vsyncpa [#allocation5], 0  ;;  %s1948_s0 = inlined_call_operand.hbm [shape: f32[2], index: 0, kind: input, shape index: {}]   ;;  %s1949_s1 = inlined_call_operand.vmem [shape: f32[1,128], index: 1, kind: input, shape index: {}]   ;;  %s1950_s2 = inlined_call_operand.hbm [shape: f32[128,512], index: 2, kind: input, shape index: {}]   ;;  %s1951_s3 = inlined_call_operand.vmem [shape: f32[1,512], index: 3, kind: input, shape index: {}]   ;;  %s1952_s4 = inlined_call_operand.hbm [shape: f32[512,512], index: 4, kind: input, shape index: {}]   ;;  %s1953_s5 = inlined_call_operand.vmem [shape: f32[1,512], index: 5, kind: input, shape index: {}]   ;;  %s1954_s6 = inlined_call_operand.hbm [shape: f32[512,128], index: 6, kind: input, shape index: {}]   ;;  %s1955_s7 = inlined_call_operand.vmem [shape: f32[1,128], index: 7, kind: input, shape index: {}]   ;;  %s1956_s8 = inlined_call_operand.hbm [shape: f32[1,128], index: 8, kind: output, shape index: {}]  }
   0x1   :  { %14 = vsyncpa [#allocation3], 0 }
   0x2   :  { %15 = vsyncpa [#allocation8], 0 }
   0x3   :  { %16 = vsyncpa [#allocation4], 0  ;;  %s1783_s27 = smov [#allocation7]   ;;  %s1784_s29 = smov [#allocation6]  }
   0x4   :  { %s46_s28 = sshll.u32 %s1783_s27, 4  ;;  %s32_s30 = sshll.u32 %s1784_s29, 4  ;;  %s47_s28 = int_to_ptr.vmem [resolvable:$true] %s46_s28  ;;  %s33_s30 = int_to_ptr.vmem [resolvable:$true] %s32_s30 }
   0x5   :  { %s1677_s11 = scalar_lea.hbm %s1952_s4, 32768 }
   0x6   :  { %p1678_p0 = scmp.ne.s32.totalorder %s1952_s4, %s1677_s11  ;;  %p1681_p1 = scmp.lt.u32.totalorder %s1677_s11, %s1952_s4 }
   0x8   :  { %p1683_p2 = pnand %p1681_p1, %p1678_p0 }
   0xa   :  { %1686 = shalt.err (!%p1683_p2)
}
   0xb   :  { %s1687_s16 = scalar_lea.vmem %s47_s28, 32768  ;;  %p1692_p4 = scmp.lt.s32.totalorder %s47_s28, %s47_s28 }
   0xc   :  { %p1688_p3 = scmp.ne.s32.totalorder %s47_s28, %s1687_s16  ;;  %p1693_p5 = scmp.lt.s32.totalorder %s1687_s16, %s1687_s16 }
   0xe   :  { %p1694_p6 = por %p1693_p5, %p1692_p4 }
  0x10   :  { %p1695_p7 = pnand %p1694_p6, %p1688_p3 }
  0x12   :  { %1698 = shalt.err (!%p1695_p7)
}
  0x13   :  { %s1785_s17 = smov 512   ;;  %s1786_s18 = smov 32  }
  0x14   :  { %52 = dma.hbm_to_vmem [thread:$0]  %s1952_s4, 32768, %s47_s28, [#allocation8], %s1785_s17, %s1785_s17, %s1786_s18  }
  0x15   :  { %s1699_s23 = scalar_lea.hbm %s1948_s0, 16 }
  0x16   :  { %p1700_p8 = scmp.ne.s32.totalorder %s1948_s0, %s1699_s23  ;;  %p1703_p9 = scmp.lt.u32.totalorder %s1699_s23, %s1948_s0 }
  0x18   :  { %p1705_p10 = pnand %p1703_p9, %p1700_p8 }
  0x1a   :  { %1708 = shalt.err (!%p1705_p10)
}
  0x1b   :  { %s1787_s29 = smov [#allocation2]   ;;  %s1709_s11 = scalar_lea.hbm %s1950_s2, 8192 }
  0x1c   :  { %24 = dma.hbm_to_smem %s1948_s0, 16, %s1787_s29, [#allocation5]  }
  0x1d   :  { %p1710_p11 = scmp.ne.s32.totalorder %s1950_s2, %s1709_s11  ;;  %p1713_p12 = scmp.lt.u32.totalorder %s1709_s11, %s1950_s2 }
  0x1f   :  { %p1715_p13 = pnand %p1713_p12, %p1710_p11 }
  0x21   :  { %1718 = shalt.err (!%p1715_p13)
}
  0x22   :  { %s1719_s16 = scalar_lea.vmem %s33_s30, 8192  ;;  %p1724_p1 = scmp.lt.s32.totalorder %s33_s30, %s33_s30 }
  0x23   :  { %p1720_p0 = scmp.ne.s32.totalorder %s33_s30, %s1719_s16  ;;  %p1725_p2 = scmp.lt.s32.totalorder %s1719_s16, %s1719_s16 }
  0x25   :  { %p1726_p3 = por %p1725_p2, %p1724_p1 }
  0x27   :  { %p1727_p4 = pnand %p1726_p3, %p1720_p0 }
  0x29   :  { %1730 = shalt.err (!%p1727_p4)
}
  0x2a   :  { %38 = dma.hbm_to_vmem [thread:$0]  %s1950_s2, 8192, %s33_s30, [#allocation3], %s1785_s17, %s1785_s17, %s1786_s18  }
  0x2b   :  { %s1788_s20 = smov [#allocation9]   ;;  %s1731_s24 = scalar_lea.hbm %s1954_s6, 8192 }
  0x2c   :  { %s60_s21 = sshll.u32 %s1788_s20, 4  ;;  %p1732_p5 = scmp.ne.s32.totalorder %s1954_s6, %s1731_s24  ;;  %s61_s21 = int_to_ptr.vmem [resolvable:$true] %s60_s21 }
  0x2d   :  { %p1735_p6 = scmp.lt.u32.totalorder %s1731_s24, %s1954_s6 }
  0x2f   :  { %p1737_p7 = pnand %p1735_p6, %p1732_p5 }
  0x31   :  { %1740 = shalt.err (!%p1737_p7)
}
  0x32   :  { %s1741_s9 = scalar_lea.vmem %s61_s21, 8192  ;;  %p1746_p9 = scmp.lt.s32.totalorder %s61_s21, %s61_s21 }
  0x33   :  { %p1742_p8 = scmp.ne.s32.totalorder %s61_s21, %s1741_s9  ;;  %p1747_p10 = scmp.lt.s32.totalorder %s1741_s9, %s1741_s9 }
  0x35   :  { %p1748_p11 = por %p1747_p10, %p1746_p9 }
  0x37   :  { %p1749_p12 = pnand %p1748_p11, %p1742_p8 }
  0x39   :  { %1752 = shalt.err (!%p1749_p12)
}
  0x3a   :  { %s1789_s2 = smov 128   ;;  %s1790_s30 = smov 8  }
  0x3b   :  { %66 = dma.hbm_to_vmem [thread:$0]  %s1954_s6, 8192, %s61_s21, [#allocation8], %s1789_s2, %s1789_s2, %s1790_s30  }
  0x3c   :  { %1775 = dma.done.wait [#allocation5], 16  }
  0x3d   :  { %1776 = vsyncadd [#allocation5], 4294967280 }
  0x3e   :  { %1777 = dma.done.wait [#allocation3], 8192  }
  0x3f   :  { %1778 = vsyncadd [#allocation3], 4294959104 }
  0x40   :  { %1779 = dma.done.wait [#allocation8], 40960  }
  0x41   :  { %1780 = vsyncadd [#allocation8], 4294926336 }
  0x42   :  { %81 = sfence }
  0x43   :  { %v86_v0 = vld [vmem:[#allocation6 + $0x8] sm:$0xff]  ;;  %v85_v2 = vld [vmem:[#allocation6] sm:$0xff]  ;;  %v1791_v7 = vmov 0.0   ;;  %v88_v28 = vld [vmem:[#allocation6 + $0x18] sm:$0xff]  ;;  %s1792_s14 = smov [#allocation10]  }
  0x44   :  { %v90_v1 = vld [vmem:[#allocation6 + $0x28] sm:$0xff]  ;;  %v89_v4 = vld [vmem:[#allocation6 + $0x20] sm:$0xff]  ;;  %235 = vmatprep.mubr.f32.mxu0 %v1791_v7  ;;  %306 = vmatprep.mubr.f32.mxu1 %v1791_v7  ;;  %v92_v29 = vld [vmem:[#allocation6 + $0x38] sm:$0xff]  ;;  %s1153_s15 = sshll.u32 %s1792_s14, 4  ;;  %s1154_s15 = int_to_ptr.vmem [resolvable:$true] %s1153_s15 }
  0x45   :  { %v1243_v3 = vpack.c.bf16 %v90_v1, %v86_v0  ;;  %v94_v5 = vld [vmem:[#allocation6 + $0x48] sm:$0xff]  ;;  %v1245_v8 = vpack.c.bf16 %v89_v4, %v85_v2  ;;  %v93_v10 = vld [vmem:[#allocation6 + $0x40] sm:$0xff]  ;;  %v87_v30 = vld [vmem:[#allocation6 + $0x10] sm:$0xff]  ;;  %v1275_v32 = vpack.c.bf16 %v92_v29, %v88_v28  ;;  %s1753_s16 = scalar_lea.vmem %s1154_s15, 16  ;;  %s1757_s0 = scalar_lea.vmem %s1154_s15, 32 }
  0x46   :  { %v98_v6 = vld [vmem:[#allocation6 + $0x68] sm:$0xff]  ;;  %v97_v11 = vld [vmem:[#allocation6 + $0x60] sm:$0xff]  ;;  %v91_v33 = vld [vmem:[#allocation6 + $0x30] sm:$0xff]  ;;  %p1754_p13 = scmp.ne.s32.totalorder %s1154_s15, %s1753_s16  ;;  %p1758_p0 = scmp.lt.s32.totalorder %s1154_s15, %s1154_s15 }
  0x47   :  { %v1247_v9 = vpack.c.bf16 %v98_v6, %v94_v5  ;;  %v102_v12 = vld [vmem:[#allocation6 + $0x88] sm:$0xff]  ;;  %1244 = vmatprep.subr.bf16.mxu0 %v1243_v3  ;;  %v1249_v14 = vpack.c.bf16 %v97_v11, %v93_v10  ;;  %v101_v16 = vld [vmem:[#allocation6 + $0x80] sm:$0xff]  ;;  %v96_v34 = vld [vmem:[#allocation6 + $0x58] sm:$0xff]  ;;  %v1277_v37 = vpack.c.bf16 %v91_v33, %v87_v30  ;;  %1276 = vmatprep.subr.bf16.mxu1 %v1275_v32  ;;  %p1759_p1 = scmp.lt.s32.totalorder %s1757_s0, %s1753_s16 }
  0x48   :  { %v106_v13 = vld [vmem:[#allocation6 + $0xa8] sm:$0xff]  ;;  %1246 = vmatpush1.bf16.msra.mxu0 %v1245_v8  ;;  %v105_v17 = vld [vmem:[#allocation6 + $0xa0] sm:$0xff]  ;;  %v100_v35 = vld [vmem:[#allocation6 + $0x78] sm:$0xff] }
  0x49   :  { %1248 = vmatprep.subr.bf16.mxu0 %v1247_v9  ;;  %v1251_v15 = vpack.c.bf16 %v106_v13, %v102_v12  ;;  %v110_v18 = vld [vmem:[#allocation6 + $0xc8] sm:$0xff]  ;;  %v1253_v20 = vpack.c.bf16 %v105_v17, %v101_v16  ;;  %v109_v22 = vld [vmem:[#allocation6 + $0xc0] sm:$0xff]  ;;  %v1279_v38 = vpack.c.bf16 %v100_v35, %v96_v34  ;;  %v95_v39 = vld [vmem:[#allocation6 + $0x50] sm:$0xff]  ;;  %1278 = vmatpush1.bf16.msra.mxu1 %v1277_v37  ;;  %p1760_p2 = por %p1759_p1, %p1758_p0 }
  0x4a   :  { %v114_v19 = vld [vmem:[#allocation6 + $0xe8] sm:$0xff]  ;;  %v113_v23 = vld [vmem:[#allocation6 + $0xe0] sm:$0xff]  ;;  %v99_v40 = vld [vmem:[#allocation6 + $0x70] sm:$0xff] }
  0x4b   :  { %v1255_v21 = vpack.c.bf16 %v114_v19, %v110_v18  ;;  %v118_v24 = vld [vmem:[#allocation6 + $0x108] sm:$0xff]  ;;  %v117_v26 = vld [vmem:[#allocation6 + $0x100] sm:$0xff]  ;;  %v1257_v31 = vpack.c.bf16 %v113_v23, %v109_v22  ;;  %v104_v41 = vld [vmem:[#allocation6 + $0x98] sm:$0xff]  ;;  %v1281_v45 = vpack.c.bf16 %v99_v40, %v95_v39  ;;  %1280 = vmatprep.subr.bf16.mxu1 %v1279_v38  ;;  %p1761_p3 = pnand %p1760_p2, %p1754_p13 }
  0x4c   :  { %1250 = vmatpush1.bf16.msra.mxu0 %v1249_v14  ;;  %v122_v25 = vld [vmem:[#allocation6 + $0x128] sm:$0xff]  ;;  %v121_v27 = vld [vmem:[#allocation6 + $0x120] sm:$0xff]  ;;  %v108_v44 = vld [vmem:[#allocation6 + $0xb8] sm:$0xff] }
  0x4d   :  { %1252 = vmatprep.subr.bf16.mxu0 %v1251_v15  ;;  %v1259_v36 = vpack.c.bf16 %v122_v25, %v118_v24  ;;  %v126_v42 = vld [vmem:[#allocation6 + $0x148] sm:$0xff]  ;;  %v1261_v46 = vpack.c.bf16 %v121_v27, %v117_v26  ;;  %v125_v47 = vld [vmem:[#allocation6 + $0x140] sm:$0xff]  ;;  %v1283_v48 = vpack.c.bf16 %v108_v44, %v104_v41  ;;  %v103_v49 = vld [vmem:[#allocation6 + $0x90] sm:$0xff]  ;;  %1282 = vmatpush1.bf16.msra.mxu1 %v1281_v45 }
  0x4e   :  { %v130_v43 = vld [vmem:[#allocation6 + $0x168] sm:$0xff]  ;;  %v107_v50 = vld [vmem:[#allocation6 + $0xb0] sm:$0xff]  ;;  %v129_v52 = vld [vmem:[#allocation6 + $0x160] sm:$0xff] }
  0x4f   :  { %v1263_v51 = vpack.c.bf16 %v130_v43, %v126_v42  ;;  %v112_v53 = vld [vmem:[#allocation6 + $0xd8] sm:$0xff]  ;;  %v134_v55 = vld [vmem:[#allocation6 + $0x188] sm:$0xff]  ;;  %v1285_v57 = vpack.c.bf16 %v107_v50, %v103_v49  ;;  %v1265_v58 = vpack.c.bf16 %v129_v52, %v125_v47  ;;  %v133_v59 = vld [vmem:[#allocation6 + $0x180] sm:$0xff]  ;;  %1284 = vmatprep.subr.bf16.mxu1 %v1283_v48 }
  0x50   :  { %1254 = vmatpush1.bf16.msra.mxu0 %v1253_v20  ;;  %v116_v54 = vld [vmem:[#allocation6 + $0xf8] sm:$0xff]  ;;  %v138_v56 = vld [vmem:[#allocation6 + $0x1a8] sm:$0xff]  ;;  %v111_v61 = vld [vmem:[#allocation6 + $0xd0] sm:$0xff] }
  0x51   :  { %1256 = vmatprep.subr.bf16.mxu0 %v1255_v21  ;;  %v1287_v60 = vpack.c.bf16 %v116_v54, %v112_v53  ;;  %v115_v62 = vld [vmem:[#allocation6 + $0xf0] sm:$0xff]  ;;  %v1267_v63 = vpack.c.bf16 %v138_v56, %v134_v55  ;;  %v137_v0 = vld [vmem:[#allocation6 + $0x1a0] sm:$0xff]  ;;  %v120_v1 = vld [vmem:[#allocation6 + $0x118] sm:$0xff]  ;;  %1286 = vmatpush1.bf16.msra.mxu1 %v1285_v57 }
  0x52   :  { %v124_v2 = vld [vmem:[#allocation6 + $0x138] sm:$0xff]  ;;  %v142_v3 = vld [vmem:[#allocation6 + $0x1c8] sm:$0xff]  ;;  %v1289_v5 = vpack.c.bf16 %v115_v62, %v111_v61  ;;  %v1269_v6 = vpack.c.bf16 %v137_v0, %v133_v59  ;;  %v141_v7 = vld [vmem:[#allocation6 + $0x1c0] sm:$0xff] }
  0x53   :  { %v146_v4 = vld [vmem:[#allocation6 + $0x1e8] sm:$0xff]  ;;  %1288 = vmatprep.subr.bf16.mxu1 %v1287_v60  ;;  %v1291_v8 = vpack.c.bf16 %v124_v2, %v120_v1  ;;  %v119_v9 = vld [vmem:[#allocation6 + $0x110] sm:$0xff]  ;;  %v145_v12 = vld [vmem:[#allocation6 + $0x1e0] sm:$0xff] }
  0x54   :  { %1258 = vmatpush1.bf16.msra.mxu0 %v1257_v31  ;;  %v123_v10 = vld [vmem:[#allocation6 + $0x130] sm:$0xff]  ;;  %v1271_v11 = vpack.c.bf16 %v146_v4, %v142_v3  ;;  %v128_v13 = vld [vmem:[#allocation6 + $0x158] sm:$0xff]  ;;  %v347_v15 = vld [vmem:[#allocation7 + $0x8] sm:$0xff]  ;;  %v1273_v18 = vpack.c.bf16 %v145_v12, %v141_v7 }
  0x55   :  { %1260 = vmatprep.subr.bf16.mxu0 %v1259_v36  ;;  %v132_v14 = vld [vmem:[#allocation6 + $0x178] sm:$0xff]  ;;  %v351_v16 = vld [vmem:[#allocation7 + $0x28] sm:$0xff]  ;;  %1290 = vmatpush1.bf16.msra.mxu1 %v1289_v5  ;;  %v1293_v17 = vpack.c.bf16 %v123_v10, %v119_v9  ;;  %v127_v20 = vld [vmem:[#allocation6 + $0x150] sm:$0xff] }
  0x56   :  { %1292 = vmatprep.subr.bf16.mxu1 %v1291_v8  ;;  %v1295_v19 = vpack.c.bf16 %v132_v14, %v128_v13  ;;  %v131_v21 = vld [vmem:[#allocation6 + $0x170] sm:$0xff]  ;;  %v136_v22 = vld [vmem:[#allocation6 + $0x198] sm:$0xff]  ;;  %v1307_v24 = vpack.c.bf16 %v351_v16, %v347_v15  ;;  %v346_v25 = vld [vmem:[#allocation7] sm:$0xff] }
  0x57   :  { %v140_v23 = vld [vmem:[#allocation6 + $0x1b8] sm:$0xff]  ;;  %v350_v26 = vld [vmem:[#allocation7 + $0x20] sm:$0xff]  ;;  %v355_v27 = vld [vmem:[#allocation7 + $0x48] sm:$0xff]  ;;  %v1297_v30 = vpack.c.bf16 %v131_v21, %v127_v20 }
  0x58   :  { %1262 = vmatpush1.bf16.msra.mxu0 %v1261_v46  ;;  %v359_v28 = vld [vmem:[#allocation7 + $0x68] sm:$0xff]  ;;  %v1889_v29 = vld [vmem:[%s1949_s1] sm:$0x1]  ;;  %v1299_v31 = vpack.c.bf16 %v140_v23, %v136_v22  ;;  %v144_v34 = vld [vmem:[#allocation6 + $0x1d8] sm:$0xff]  ;;  %v1309_v35 = vpack.c.bf16 %v350_v26, %v346_v25  ;;  %s83_s1 = sld [smem:[#allocation2]] }
  0x59   :  { %1264 = vmatprep.subr.bf16.mxu0 %v1263_v51  ;;  %1294 = vmatpush1.bf16.msra.mxu1 %v1293_v17  ;;  %v135_v32 = vld [vmem:[#allocation6 + $0x190] sm:$0xff]  ;;  %v148_v36 = vld [vmem:[#allocation6 + $0x1f8] sm:$0xff]  ;;  %v1311_v37 = vpack.c.bf16 %v359_v28, %v355_v27  ;;  %v354_v38 = vld [vmem:[#allocation7 + $0x40] sm:$0xff] }
  0x5a   :  { %1296 = vmatprep.subr.bf16.mxu1 %v1295_v19  ;;  %v139_v33 = vld [vmem:[#allocation6 + $0x1b0] sm:$0xff]  ;;  %v358_v39 = vld [vmem:[#allocation7 + $0x60] sm:$0xff]  ;;  %v363_v40 = vld [vmem:[#allocation7 + $0x88] sm:$0xff]  ;;  %v1303_v43 = vpack.c.bf16 %v148_v36, %v144_v34 }
  0x5b   :  { %v367_v41 = vld [vmem:[#allocation7 + $0xa8] sm:$0xff]  ;;  %v1301_v42 = vpack.c.bf16 %v139_v33, %v135_v32  ;;  %v143_v44 = vld [vmem:[#allocation6 + $0x1d0] sm:$0xff]  ;;  %v349_v46 = vld [vmem:[#allocation7 + $0x18] sm:$0xff]  ;;  %v1313_v47 = vpack.c.bf16 %v358_v39, %v354_v38 }
  0x5c   :  { %1266 = vmatpush1.bf16.msra.mxu0 %v1265_v58  ;;  %v147_v45 = vld [vmem:[#allocation6 + $0x1f0] sm:$0xff]  ;;  %v353_v48 = vld [vmem:[#allocation7 + $0x38] sm:$0xff]  ;;  %v1315_v49 = vpack.c.bf16 %v367_v41, %v363_v40  ;;  %v362_v50 = vld [vmem:[#allocation7 + $0x80] sm:$0xff] }
  0x5d   :  { %1268 = vmatprep.subr.bf16.mxu0 %v1267_v63  ;;  %1298 = vmatpush1.bf16.msra.mxu1 %v1297_v30  ;;  %v366_v51 = vld [vmem:[#allocation7 + $0xa0] sm:$0xff]  ;;  %v371_v52 = vld [vmem:[#allocation7 + $0xc8] sm:$0xff]  ;;  %v1305_v54 = vpack.c.bf16 %v147_v45, %v143_v44  ;;  %v1435_v55 = vpack.c.bf16 %v353_v48, %v349_v46  ;;  %v348_v56 = vld [vmem:[#allocation7 + $0x10] sm:$0xff] }
  0x5e   :  { %1300 = vmatprep.subr.bf16.mxu1 %v1299_v31  ;;  %v375_v53 = vld [vmem:[#allocation7 + $0xe8] sm:$0xff]  ;;  %v352_v57 = vld [vmem:[#allocation7 + $0x30] sm:$0xff]  ;;  %v357_v58 = vld [vmem:[#allocation7 + $0x58] sm:$0xff]  ;;  %v1317_v59 = vpack.c.bf16 %v366_v51, %v362_v50 }
  0x5f   :  { %v361_v60 = vld [vmem:[#allocation7 + $0x78] sm:$0xff]  ;;  %v1319_v61 = vpack.c.bf16 %v375_v53, %v371_v52  ;;  %v370_v62 = vld [vmem:[#allocation7 + $0xc0] sm:$0xff]  ;;  %v379_v0 = vld [vmem:[#allocation7 + $0x108] sm:$0xff]  ;;  %v1437_v2 = vpack.c.bf16 %v352_v57, %v348_v56 }
  0x60   :  { %1270 = vmatpush1.bf16.msra.mxu0 %v1269_v6  ;;  %v374_v63 = vld [vmem:[#allocation7 + $0xe0] sm:$0xff]  ;;  %v383_v1 = vld [vmem:[#allocation7 + $0x128] sm:$0xff]  ;;  %v1439_v3 = vpack.c.bf16 %v361_v60, %v357_v58  ;;  %v356_v4 = vld [vmem:[#allocation7 + $0x50] sm:$0xff] }
  0x61   :  { %1272 = vmatprep.subr.bf16.mxu0 %v1271_v11  ;;  %1302 = vmatpush1.bf16.msra.mxu1 %v1301_v42  ;;  %v360_v5 = vld [vmem:[#allocation7 + $0x70] sm:$0xff]  ;;  %v365_v6 = vld [vmem:[#allocation7 + $0x98] sm:$0xff]  ;;  %v1321_v7 = vpack.c.bf16 %v374_v63, %v370_v62  ;;  %v1323_v9 = vpack.c.bf16 %v383_v1, %v379_v0  ;;  %v378_v10 = vld [vmem:[#allocation7 + $0x100] sm:$0xff] }
  0x62   :  { %1304 = vmatprep.subr.bf16.mxu1 %v1303_v43  ;;  %v369_v8 = vld [vmem:[#allocation7 + $0xb8] sm:$0xff]  ;;  %v382_v11 = vld [vmem:[#allocation7 + $0x120] sm:$0xff]  ;;  %v387_v12 = vld [vmem:[#allocation7 + $0x148] sm:$0xff]  ;;  %v1441_v14 = vpack.c.bf16 %v360_v5, %v356_v4 }
  0x63   :  { %v391_v13 = vld [vmem:[#allocation7 + $0x168] sm:$0xff]  ;;  %v1443_v15 = vpack.c.bf16 %v369_v8, %v365_v6  ;;  %v364_v16 = vld [vmem:[#allocation7 + $0x90] sm:$0xff]  ;;  %v1325_v19 = vpack.c.bf16 %v382_v11, %v378_v10  ;;  %v377_v20 = vld [vmem:[#allocation7 + $0xf8] sm:$0xff] }
  0x64   :  { %1274 = vmatpush1.bf16.msra.mxu0 %v1273_v18  ;;  %v368_v17 = vld [vmem:[#allocation7 + $0xb0] sm:$0xff]  ;;  %v373_v18 = vld [vmem:[#allocation7 + $0xd8] sm:$0xff]  ;;  %v1327_v21 = vpack.c.bf16 %v391_v13, %v387_v12  ;;  %v386_v22 = vld [vmem:[#allocation7 + $0x140] sm:$0xff] }
  0x65   :  { %1308 = vmatprep.subr.bf16.mxu0 %v1307_v24  ;;  %1306 = vmatpush1.bf16.msra.mxu1 %v1305_v54  ;;  %v390_v23 = vld [vmem:[#allocation7 + $0x160] sm:$0xff]  ;;  %v395_v24 = vld [vmem:[#allocation7 + $0x188] sm:$0xff]  ;;  %v1445_v26 = vpack.c.bf16 %v368_v17, %v364_v16  ;;  %v1447_v27 = vpack.c.bf16 %v377_v20, %v373_v18  ;;  %v372_v28 = vld [vmem:[#allocation7 + $0xd0] sm:$0xff] }
  0x66   :  { %1436 = vmatprep.subr.bf16.mxu1 %v1435_v55  ;;  %v399_v25 = vld [vmem:[#allocation7 + $0x1a8] sm:$0xff]  ;;  %v381_v30 = vld [vmem:[#allocation7 + $0x118] sm:$0xff]  ;;  %v1329_v31 = vpack.c.bf16 %v390_v23, %v386_v22  ;;  %v394_v34 = vld [vmem:[#allocation7 + $0x180] sm:$0xff] }
  0x67   :  { %236 = vmatmul.mubr.f32.vlgmr.msra.gmra.mrb[0].mxu0 %v1889_v29  ;;  %v385_v32 = vld [vmem:[#allocation7 + $0x138] sm:$0xff]  ;;  %v1331_v33 = vpack.c.bf16 %v399_v25, %v395_v24  ;;  %v403_v36 = vld [vmem:[#allocation7 + $0x1c8] sm:$0xff]  ;;  %v380_v40 = vld [vmem:[#allocation7 + $0x110] sm:$0xff] }
  0x68   :  { %1310 = vmatpush1.bf16.msra.mxu0 %v1309_v35  ;;  %307 = vmatmul.mubr.f32.vlgmr.msra.gmra.mrb[0].mxu1 %v1889_v29  ;;  %v376_v29 = vld [vmem:[#allocation7 + $0xf0] sm:$0xff]  ;;  %v398_v35 = vld [vmem:[#allocation7 + $0x1a0] sm:$0xff]  ;;  %v1451_v39 = vpack.c.bf16 %v385_v32, %v381_v30  ;;  %v389_v42 = vld [vmem:[#allocation7 + $0x158] sm:$0xff] }
  0x69   :  { %1312 = vmatprep.subr.bf16.mxu0 %v1311_v37  ;;  %1438 = vmatpush1.bf16.msra.mxu1 %v1437_v2  ;;  %v407_v37 = vld [vmem:[#allocation7 + $0x1e8] sm:$0xff]  ;;  %v1449_v38 = vpack.c.bf16 %v376_v29, %v372_v28  ;;  %v384_v41 = vld [vmem:[#allocation7 + $0x130] sm:$0xff]  ;;  %v1333_v43 = vpack.c.bf16 %v398_v35, %v394_v34  ;;  %v393_v44 = vld [vmem:[#allocation7 + $0x178] sm:$0xff] }
  0x6a   :  { %1440 = vmatprep.subr.bf16.mxu1 %v1439_v3  ;;  %v1335_v45 = vpack.c.bf16 %v407_v37, %v403_v36  ;;  %v402_v46 = vld [vmem:[#allocation7 + $0x1c0] sm:$0xff]  ;;  %v1453_v48 = vpack.c.bf16 %v384_v41, %v380_v40  ;;  %v388_v50 = vld [vmem:[#allocation7 + $0x150] sm:$0xff]  ;;  %v397_v53 = vld [vmem:[#allocation7 + $0x198] sm:$0xff] }
  0x6b   :  { %v392_v51 = vld [vmem:[#allocation7 + $0x170] sm:$0xff]  ;;  %v401_v54 = vld [vmem:[#allocation7 + $0x1b8] sm:$0xff]  ;;  %v411_v2 = vld [vmem:[#allocation7 + $0x208] sm:$0xff] }
  0x6c   :  { %1314 = vmatpush1.bf16.msra.mxu0 %v1313_v47  ;;  %v406_v47 = vld [vmem:[#allocation7 + $0x1e0] sm:$0xff]  ;;  %v1457_v55 = vpack.c.bf16 %v392_v51, %v388_v50  ;;  %v1459_v56 = vpack.c.bf16 %v401_v54, %v397_v53  ;;  %v396_v57 = vld [vmem:[#allocation7 + $0x190] sm:$0xff]  ;;  %v409_v60 = vld [vmem:[#allocation7 + $0x1f8] sm:$0xff] }
  0x6d   :  { %1316 = vmatprep.subr.bf16.mxu0 %v1315_v49  ;;  %1442 = vmatpush1.bf16.msra.mxu1 %v1441_v14  ;;  %v1455_v49 = vpack.c.bf16 %v393_v44, %v389_v42  ;;  %v1337_v52 = vpack.c.bf16 %v406_v47, %v402_v46  ;;  %v400_v58 = vld [vmem:[#allocation7 + $0x1b0] sm:$0xff]  ;;  %v415_v3 = vld [vmem:[#allocation7 + $0x228] sm:$0xff]  ;;  %v413_v4 = vld [vmem:[#allocation7 + $0x218] sm:$0xff] }
  0x6e   :  { %1444 = vmatprep.subr.bf16.mxu1 %v1443_v15  ;;  %v404_v63 = vld [vmem:[#allocation7 + $0x1d0] sm:$0xff]  ;;  %v1339_v5 = vpack.c.bf16 %v415_v3, %v411_v2  ;;  %v417_v6 = vld [vmem:[#allocation7 + $0x238] sm:$0xff]  ;;  %v414_v8 = vld [vmem:[#allocation7 + $0x220] sm:$0xff] }
  0x6f   :  { %v408_v0 = vld [vmem:[#allocation7 + $0x1f0] sm:$0xff]  ;;  %v419_v14 = vld [vmem:[#allocation7 + $0x248] sm:$0xff]  ;;  %v421_v16 = vld [vmem:[#allocation7 + $0x258] sm:$0xff] }
  0x70   :  { %1318 = vmatpush1.bf16.msra.mxu0 %v1317_v59  ;;  %v405_v59 = vld [vmem:[#allocation7 + $0x1d8] sm:$0xff]  ;;  %v1465_v1 = vpack.c.bf16 %v408_v0, %v404_v63  ;;  %v412_v11 = vld [vmem:[#allocation7 + $0x210] sm:$0xff]  ;;  %v423_v15 = vld [vmem:[#allocation7 + $0x268] sm:$0xff] }
  0x71   :  { %1320 = vmatprep.subr.bf16.mxu0 %v1319_v61  ;;  %1446 = vmatpush1.bf16.msra.mxu1 %v1445_v26  ;;  %v1461_v61 = vpack.c.bf16 %v400_v58, %v396_v57  ;;  %v1463_v62 = vpack.c.bf16 %v409_v60, %v405_v59  ;;  %v416_v12 = vld [vmem:[#allocation7 + $0x230] sm:$0xff]  ;;  %v1343_v17 = vpack.c.bf16 %v423_v15, %v419_v14  ;;  %v425_v18 = vld [vmem:[#allocation7 + $0x278] sm:$0xff]  ;;  %v422_v20 = vld [vmem:[#allocation7 + $0x260] sm:$0xff] }
  0x72   :  { %1448 = vmatprep.subr.bf16.mxu1 %v1447_v27  ;;  %v1469_v13 = vpack.c.bf16 %v416_v12, %v412_v11  ;;  %v420_v23 = vld [vmem:[#allocation7 + $0x250] sm:$0xff]  ;;  %v427_v26 = vld [vmem:[#allocation7 + $0x288] sm:$0xff]  ;;  %v429_v28 = vld [vmem:[#allocation7 + $0x298] sm:$0xff] }
  0x73   :  { %v424_v24 = vld [vmem:[#allocation7 + $0x270] sm:$0xff]  ;;  %v431_v27 = vld [vmem:[#allocation7 + $0x2a8] sm:$0xff]  ;;  %v433_v30 = vld [vmem:[#allocation7 + $0x2b8] sm:$0xff] }
  0x74   :  { %1322 = vmatpush1.bf16.msra.mxu0 %v1321_v7  ;;  %v410_v7 = vld [vmem:[#allocation7 + $0x200] sm:$0xff]  ;;  %v1473_v25 = vpack.c.bf16 %v424_v24, %v420_v23  ;;  %v1347_v29 = vpack.c.bf16 %v431_v27, %v427_v26  ;;  %v428_v35 = vld [vmem:[#allocation7 + $0x290] sm:$0xff]  ;;  %v437_v40 = vld [vmem:[#allocation7 + $0x2d8] sm:$0xff] }
  0x75   :  { %1324 = vmatprep.subr.bf16.mxu0 %v1323_v9  ;;  %1450 = vmatpush1.bf16.msra.mxu1 %v1449_v38  ;;  %v1467_v9 = vpack.c.bf16 %v417_v6, %v413_v4  ;;  %v1341_v10 = vpack.c.bf16 %v414_v8, %v410_v7  ;;  %v430_v32 = vld [vmem:[#allocation7 + $0x2a0] sm:$0xff]  ;;  %v432_v36 = vld [vmem:[#allocation7 + $0x2b0] sm:$0xff]  ;;  %v435_v38 = vld [vmem:[#allocation7 + $0x2c8] sm:$0xff] }
  0x76   :  { %1452 = vmatprep.subr.bf16.mxu1 %v1451_v39  ;;  %v1477_v37 = vpack.c.bf16 %v432_v36, %v428_v35  ;;  %v439_v39 = vld [vmem:[#allocation7 + $0x2e8] sm:$0xff]  ;;  %v441_v42 = vld [vmem:[#allocation7 + $0x2f8] sm:$0xff]  ;;  %v438_v44 = vld [vmem:[#allocation7 + $0x2e0] sm:$0xff] }
  0x77   :  { %v1351_v41 = vpack.c.bf16 %v439_v39, %v435_v38  ;;  %v436_v47 = vld [vmem:[#allocation7 + $0x2d0] sm:$0xff]  ;;  %v443_v50 = vld [vmem:[#allocation7 + $0x308] sm:$0xff]  ;;  %v449_v54 = vld [vmem:[#allocation7 + $0x338] sm:$0xff] }
  0x78   :  { %1326 = vmatpush1.bf16.msra.mxu0 %v1325_v19  ;;  %v418_v19 = vld [vmem:[#allocation7 + $0x240] sm:$0xff]  ;;  %v447_v51 = vld [vmem:[#allocation7 + $0x328] sm:$0xff]  ;;  %v444_v59 = vld [vmem:[#allocation7 + $0x310] sm:$0xff] }
  0x79   :  { %1328 = vmatprep.subr.bf16.mxu0 %v1327_v21  ;;  %1454 = vmatpush1.bf16.msra.mxu1 %v1453_v48  ;;  %v1471_v21 = vpack.c.bf16 %v425_v18, %v421_v16  ;;  %v1345_v22 = vpack.c.bf16 %v422_v20, %v418_v19  ;;  %v440_v48 = vld [vmem:[#allocation7 + $0x2f0] sm:$0xff]  ;;  %v1355_v53 = vpack.c.bf16 %v447_v51, %v443_v50  ;;  %v455_v63 = vld [vmem:[#allocation7 + $0x368] sm:$0xff]  ;;  %v453_v0 = vld [vmem:[#allocation7 + $0x358] sm:$0xff] }
  0x7a   :  { %1456 = vmatprep.subr.bf16.mxu1 %v1455_v49  ;;  %v1481_v49 = vpack.c.bf16 %v440_v48, %v436_v47  ;;  %v448_v60 = vld [vmem:[#allocation7 + $0x330] sm:$0xff]  ;;  %v457_v2 = vld [vmem:[#allocation7 + $0x378] sm:$0xff]  ;;  %v450_v3 = vld [vmem:[#allocation7 + $0x340] sm:$0xff]  ;;  %v313_v48 = vstv %s83_s1 }
  0x7b   :  { %v454_v4 = vld [vmem:[#allocation7 + $0x360] sm:$0xff]  ;;  %v452_v7 = vld [vmem:[#allocation7 + $0x350] sm:$0xff]  ;;  %v463_v11 = vld [vmem:[#allocation7 + $0x3a8] sm:$0xff] }
  0x7c   :  { %1330 = vmatpush1.bf16.msra.mxu0 %v1329_v31  ;;  %v426_v31 = vld [vmem:[#allocation7 + $0x280] sm:$0xff]  ;;  %v1361_v6 = vpack.c.bf16 %v454_v4, %v450_v3  ;;  %v456_v8 = vld [vmem:[#allocation7 + $0x370] sm:$0xff]  ;;  %v461_v12 = vld [vmem:[#allocation7 + $0x398] sm:$0xff] }
  0x7d   :  { %1332 = vmatprep.subr.bf16.mxu0 %v1331_v33  ;;  %1458 = vmatpush1.bf16.msra.mxu1 %v1457_v55  ;;  %v1475_v33 = vpack.c.bf16 %v433_v30, %v429_v28  ;;  %v1349_v34 = vpack.c.bf16 %v430_v32, %v426_v31  ;;  %v442_v55 = vld [vmem:[#allocation7 + $0x300] sm:$0xff]  ;;  %v465_v14 = vld [vmem:[#allocation7 + $0x3b8] sm:$0xff]  ;;  %v460_v19 = vld [vmem:[#allocation7 + $0x390] sm:$0xff] }
  0x7e   :  { %1460 = vmatprep.subr.bf16.mxu1 %v1459_v56  ;;  %v446_v56 = vld [vmem:[#allocation7 + $0x320] sm:$0xff]  ;;  %v464_v20 = vld [vmem:[#allocation7 + $0x3b0] sm:$0xff]  ;;  %v471_v23 = vld [vmem:[#allocation7 + $0x3e8] sm:$0xff] }
  0x7f   :  { %v1357_v58 = vpack.c.bf16 %v446_v56, %v442_v55  ;;  %v458_v15 = vld [vmem:[#allocation7 + $0x380] sm:$0xff]  ;;  %v469_v24 = vld [vmem:[#allocation7 + $0x3d8] sm:$0xff]  ;;  %v468_v31 = vld [vmem:[#allocation7 + $0x3d0] sm:$0xff] }
  0x80   :  { %1334 = vmatpush1.bf16.msra.mxu0 %v1333_v43  ;;  %v434_v43 = vld [vmem:[#allocation7 + $0x2c0] sm:$0xff]  ;;  %v473_v26 = vld [vmem:[#allocation7 + $0x3f8] sm:$0xff]  ;;  %v472_v32 = vld [vmem:[#allocation7 + $0x3f0] sm:$0xff] }
  0x81   :  { %1336 = vmatprep.subr.bf16.mxu0 %v1335_v45  ;;  %1462 = vmatpush1.bf16.msra.mxu1 %v1461_v61  ;;  %v1479_v45 = vpack.c.bf16 %v441_v42, %v437_v40  ;;  %v1353_v46 = vpack.c.bf16 %v438_v44, %v434_v43  ;;  %v1485_v61 = vpack.c.bf16 %v448_v60, %v444_v59  ;;  %v462_v16 = vld [vmem:[#allocation7 + $0x3a0] sm:$0xff]  ;;  %v479_v35 = vld [vmem:[#allocation7 + $0x428] sm:$0xff]  ;;  %v477_v36 = vld [vmem:[#allocation7 + $0x418] sm:$0xff]  ;;  %v151_v40 = vlaneseq }
  0x82   :  { %1464 = vmatprep.subr.bf16.mxu1 %v1463_v62  ;;  %v451_v62 = vld [vmem:[#allocation7 + $0x348] sm:$0xff]  ;;  %v1365_v18 = vpack.c.bf16 %v462_v16, %v458_v15  ;;  %v466_v27 = vld [vmem:[#allocation7 + $0x3c0] sm:$0xff]  ;;  %v481_v38 = vld [vmem:[#allocation7 + $0x438] sm:$0xff] }
  0x83   :  { %v470_v28 = vld [vmem:[#allocation7 + $0x3e0] sm:$0xff]  ;;  %v1499_v39 = vpack.c.bf16 %v481_v38, %v477_v36  ;;  %v149_v43 = vld [vmem:[%s1951_s3] sm:$0xf]  ;;  %v483_v15 = vld [vmem:[#allocation7 + $0x448] sm:$0xff]  ;;  %s1164_s3 = sld [smem:[#allocation2 + $0x1]] }
  0x84   :  { %1338 = vmatpush1.bf16.msra.mxu0 %v1337_v52  ;;  %v445_v52 = vld [vmem:[#allocation7 + $0x318] sm:$0xff]  ;;  %v1369_v30 = vpack.c.bf16 %v470_v28, %v466_v27  ;;  %v490_v38 = vld [vmem:[#allocation7 + $0x480] sm:$0xff] }
  0x85   :  { %1466 = vmatpush1.bf16.msra.mxu1 %v1465_v1  ;;  %1340 = vmatprep.subr.bf16.mxu0 %v1339_v5  ;;  %v1483_v57 = vpack.c.bf16 %v449_v54, %v445_v52  ;;  %v1359_v1 = vpack.c.bf16 %v455_v63, %v451_v62  ;;  %v1487_v5 = vpack.c.bf16 %v457_v2, %v453_v0 }
  0x86   :  { %1468 = vmatprep.subr.bf16.mxu1 %v1467_v9  ;;  %v1489_v9 = vpack.c.bf16 %v456_v8, %v452_v7 }
  0x88   :  { %1342 = vmatpush1.bf16.msra.mxu0 %v1341_v10  ;;  %v459_v10 = vld [vmem:[#allocation7 + $0x388] sm:$0xff] }
  0x89   :  { %1470 = vmatpush1.bf16.msra.mxu1 %v1469_v13  ;;  %1344 = vmatprep.subr.bf16.mxu0 %v1343_v17  ;;  %v1363_v13 = vpack.c.bf16 %v463_v11, %v459_v10  ;;  %v1491_v17 = vpack.c.bf16 %v465_v14, %v461_v12  ;;  %v478_v10 = vld [vmem:[#allocation7 + $0x420] sm:$0xff]  ;;  %v480_v14 = vld [vmem:[#allocation7 + $0x430] sm:$0xff] }
  0x8a   :  { %1472 = vmatprep.subr.bf16.mxu1 %v1471_v21  ;;  %v1493_v21 = vpack.c.bf16 %v464_v20, %v460_v19  ;;  %v485_v19 = vld [vmem:[#allocation7 + $0x458] sm:$0xff] }
  0x8b   :  { %v489_v20 = vld [vmem:[#allocation7 + $0x478] sm:$0xff] }
  0x8c   :  { %1346 = vmatpush1.bf16.msra.mxu0 %v1345_v22  ;;  %v467_v22 = vld [vmem:[#allocation7 + $0x3c8] sm:$0xff] }
  0x8d   :  { %1474 = vmatpush1.bf16.msra.mxu1 %v1473_v25  ;;  %1348 = vmatprep.subr.bf16.mxu0 %v1347_v29  ;;  %v1367_v25 = vpack.c.bf16 %v471_v23, %v467_v22  ;;  %v1495_v29 = vpack.c.bf16 %v473_v26, %v469_v24  ;;  %v486_v26 = vld [vmem:[#allocation7 + $0x460] sm:$0xff] }
  0x8e   :  { %1476 = vmatprep.subr.bf16.mxu1 %v1475_v33  ;;  %v1497_v33 = vpack.c.bf16 %v472_v32, %v468_v31  ;;  %v488_v31 = vld [vmem:[#allocation7 + $0x470] sm:$0xff]  ;;  %v491_v32 = vld [vmem:[#allocation7 + $0x488] sm:$0xff] }
  0x90   :  { %1350 = vmatpush1.bf16.msra.mxu0 %v1349_v34  ;;  %v475_v34 = vld [vmem:[#allocation7 + $0x408] sm:$0xff] }
  0x91   :  { %1478 = vmatpush1.bf16.msra.mxu1 %v1477_v37  ;;  %1352 = vmatprep.subr.bf16.mxu0 %v1351_v41  ;;  %v1371_v37 = vpack.c.bf16 %v479_v35, %v475_v34  ;;  %v1893_v41 = vshrl.u32 %v151_v40, 7  ;;  %v493_v34 = vld [vmem:[#allocation7 + $0x498] sm:$0xff] }
  0x92   :  { %1480 = vmatprep.subr.bf16.mxu1 %v1479_v45  ;;  %v497_v35 = vld [vmem:[#allocation7 + $0x4b8] sm:$0xff] }
  0x93   :  { %v153_v42 = vsub.s32 0, %v1893_v41  ;;  %v157_v44 = vsub.s32 1, %v1893_v41  ;;  %v161_v54 = vsub.s32 2, %v1893_v41  ;;  %v165_v56 = vsub.s32 3, %v1893_v41 }
  0x94   :  { %1354 = vmatpush1.bf16.msra.mxu0 %v1353_v46 }
  0x95   :  { %1482 = vmatpush1.bf16.msra.mxu1 %v1481_v49  ;;  %1356 = vmatprep.subr.bf16.mxu0 %v1355_v53  ;;  %v154_v45 = vrot.slane %v149_v43, %v153_v42  ;;  %v158_v46 = vrot.slane %v149_v43, %v157_v44  ;;  %v166_v59 = vrot.slane %v149_v43, %v165_v56 }
  0x96   :  { %1484 = vmatprep.subr.bf16.mxu1 %v1483_v57 }
  0x98   :  { %1358 = vmatpush1.bf16.msra.mxu0 %v1357_v58  ;;  %v162_v58 = vrot.slane %v149_v43, %v161_v54  ;;  %v1507_v43 = vpack.c.bf16 %v497_v35, %v493_v34  ;;  %v524_v35 = vld [vmem:[#allocation7 + $0x590] sm:$0xff] }
  0x99   :  { %1486 = vmatpush1.bf16.msra.mxu1 %v1485_v61  ;;  %1360 = vmatprep.subr.bf16.mxu0 %v1359_v1 }
  0x9a   :  { %1488 = vmatprep.subr.bf16.mxu1 %v1487_v5 }
  0x9c   :  { %1362 = vmatpush1.bf16.msra.mxu0 %v1361_v6 }
  0x9d   :  { %1490 = vmatpush1.bf16.msra.mxu1 %v1489_v9  ;;  %1364 = vmatprep.subr.bf16.mxu0 %v1363_v13  ;;  %v474_v9 = vld [vmem:[#allocation7 + $0x400] sm:$0xff]  ;;  %v476_v13 = vld [vmem:[#allocation7 + $0x410] sm:$0xff] }
  0x9e   :  { %1492 = vmatprep.subr.bf16.mxu1 %v1491_v17  ;;  %v1373_v23 = vpack.c.bf16 %v478_v10, %v474_v9  ;;  %v1501_v24 = vpack.c.bf16 %v480_v14, %v476_v13  ;;  %v506_v9 = vld [vmem:[#allocation7 + $0x500] sm:$0xff]  ;;  %v508_v13 = vld [vmem:[#allocation7 + $0x510] sm:$0xff] }
  0x9f   :  { %v510_v10 = vld [vmem:[#allocation7 + $0x520] sm:$0xff]  ;;  %v512_v14 = vld [vmem:[#allocation7 + $0x530] sm:$0xff] }
  0xa0   :  { %1366 = vmatpush1.bf16.msra.mxu0 %v1365_v18  ;;  %v487_v18 = vld [vmem:[#allocation7 + $0x468] sm:$0xff] }
  0xa1   :  { %1494 = vmatpush1.bf16.msra.mxu1 %v1493_v21  ;;  %1368 = vmatprep.subr.bf16.mxu0 %v1367_v25  ;;  %v482_v25 = vld [vmem:[#allocation7 + $0x440] sm:$0xff]  ;;  %v1375_v28 = vpack.c.bf16 %v487_v18, %v483_v15  ;;  %v515_v15 = vld [vmem:[#allocation7 + $0x548] sm:$0xff]  ;;  %v1517_v18 = vpack.c.bf16 %v512_v14, %v508_v13 }
  0xa2   :  { %1496 = vmatprep.subr.bf16.mxu1 %v1495_v29  ;;  %v1503_v29 = vpack.c.bf16 %v489_v20, %v485_v19  ;;  %v1377_v36 = vpack.c.bf16 %v486_v26, %v482_v25  ;;  %v514_v19 = vld [vmem:[#allocation7 + $0x540] sm:$0xff]  ;;  %v523_v25 = vld [vmem:[#allocation7 + $0x588] sm:$0xff] }
  0xa3   :  { %v518_v20 = vld [vmem:[#allocation7 + $0x560] sm:$0xff]  ;;  %v527_v26 = vld [vmem:[#allocation7 + $0x5a8] sm:$0xff] }
  0xa4   :  { %1370 = vmatpush1.bf16.msra.mxu0 %v1369_v30  ;;  %v484_v30 = vld [vmem:[#allocation7 + $0x450] sm:$0xff] }
  0xa5   :  { %1498 = vmatpush1.bf16.msra.mxu1 %v1497_v33  ;;  %1372 = vmatprep.subr.bf16.mxu0 %v1371_v37  ;;  %v495_v33 = vld [vmem:[#allocation7 + $0x4a8] sm:$0xff]  ;;  %v1505_v37 = vpack.c.bf16 %v488_v31, %v484_v30  ;;  %v522_v31 = vld [vmem:[#allocation7 + $0x580] sm:$0xff] }
  0xa6   :  { %1500 = vmatprep.subr.bf16.mxu1 %v1499_v39  ;;  %v494_v39 = vld [vmem:[#allocation7 + $0x4a0] sm:$0xff]  ;;  %v1379_v40 = vpack.c.bf16 %v495_v33, %v491_v32  ;;  %v1395_v33 = vpack.c.bf16 %v527_v26, %v523_v25  ;;  %v556_v25 = vld [vmem:[#allocation7 + $0x690] sm:$0xff] }
  0xa7   :  { %v526_v32 = vld [vmem:[#allocation7 + $0x5a0] sm:$0xff]  ;;  %v560_v26 = vld [vmem:[#allocation7 + $0x6b0] sm:$0xff] }
 0x13a   :  { %v237_v47 = vpop.f32.mrb[0].mxu0 }
 0x13b   :  { %v238_v49 = vadd.f32 %v237_v47, %v154_v45  ;;  %v239_v50 = vpop.f32.mrb[1].mxu0  ;;  %v308_v60 = vpop.f32.mrb[0].mxu1  ;;  %v492_v45 = vld [vmem:[#allocation7 + $0x490] sm:$0xff]  ;;  %v499_v47 = vld [vmem:[#allocation7 + $0x4c8] sm:$0xff] }
 0x13c   :  { %v240_v51 = vadd.f32 %v239_v50, %v158_v46  ;;  %v1910_v61 = vadd.f32 %v308_v60, %v162_v58  ;;  %v310_v62 = vpop.f32.mrb[1].mxu1  ;;  %v496_v46 = vld [vmem:[#allocation7 + $0x4b0] sm:$0xff]  ;;  %v505_v50 = vld [vmem:[#allocation7 + $0x4f8] sm:$0xff] }
 0x13d   :  { %v314_v52 = vmul.f32 %v313_v48, %v238_v49  ;;  %v1912_v63 = vadd.f32 %v310_v62, %v166_v59  ;;  %v500_v60 = vld [vmem:[#allocation7 + $0x4d0] sm:$0xff] }
 0x13e   :  { %v315_v53 = vmul.f32 %v313_v48, %v240_v51  ;;  %v316_v0 = vmul.f32 %v313_v48, %v1910_v61  ;;  %v504_v62 = vld [vmem:[#allocation7 + $0x4f0] sm:$0xff] }
 0x13f   :  { %v1165_v55 = vmul.f32 -1.442695, %v314_v52  ;;  %v317_v1 = vmul.f32 %v313_v48, %v1912_v63  ;;  %v503_v48 = vld [vmem:[#allocation7 + $0x4e8] sm:$0xff]  ;;  %v1509_v52 = vpack.c.bf16 %v496_v46, %v492_v45  ;;  %v530_v46 = vld [vmem:[#allocation7 + $0x5c0] sm:$0xff] }
 0x140   :  { %v1166_v57 = vmul.f32 -1.442695, %v315_v53  ;;  %v1167_v2 = vmul.f32 -1.442695, %v316_v0  ;;  %v498_v53 = vld [vmem:[#allocation7 + $0x4c0] sm:$0xff]  ;;  %v1383_v58 = vpack.c.bf16 %v503_v48, %v499_v47  ;;  %v507_v0 = vld [vmem:[#allocation7 + $0x508] sm:$0xff] }
 0x141   :  { %1645 = vpow2.f32 %v1165_v55  ;;  %v1168_v4 = vmul.f32 -1.442695, %v317_v1  ;;  %v502_v55 = vld [vmem:[#allocation7 + $0x4e0] sm:$0xff] }
 0x142   :  { %1647 = vpow2.f32 %v1166_v57  ;;  %v534_v47 = vld [vmem:[#allocation7 + $0x5e0] sm:$0xff] }
 0x143   :  { %1649 = vpow2.f32 %v1167_v2 }
 0x144   :  { %1651 = vpow2.f32 %v1168_v4  ;;  %v509_v4 = vld [vmem:[#allocation7 + $0x518] sm:$0xff] }
 0x14b   :  { %v1646_v3 = vpop.eup %1645 }
 0x14c   :  { %v1648_v5 = vpop.eup %1647  ;;  %v330_v6 = vadd.f32 1.0, %v1646_v3  ;;  %v511_v3 = vld [vmem:[#allocation7 + $0x528] sm:$0xff] }
 0x14d   :  { %v331_v7 = vadd.f32 1.0, %v1648_v5  ;;  %v1650_v8 = vpop.eup %1649  ;;  %v513_v5 = vld [vmem:[#allocation7 + $0x538] sm:$0xff] }
 0x14e   :  { %1653 = vrcp.f32 %v330_v6  ;;  %v1652_v11 = vpop.eup %1651  ;;  %v332_v12 = vadd.f32 1.0, %v1650_v8  ;;  %v1513_v8 = vpack.c.bf16 %v504_v62, %v500_v60  ;;  %v538_v60 = vld [vmem:[#allocation7 + $0x600] sm:$0xff] }
 0x14f   :  { %1655 = vrcp.f32 %v331_v7  ;;  %v333_v17 = vadd.f32 1.0, %v1652_v11  ;;  %v1385_v7 = vpack.c.bf16 %v502_v55, %v498_v53  ;;  %v1387_v11 = vpack.c.bf16 %v511_v3, %v507_v0  ;;  %v543_v53 = vld [vmem:[#allocation7 + $0x628] sm:$0xff]  ;;  %v541_v55 = vld [vmem:[#allocation7 + $0x618] sm:$0xff]  ;;  %v542_v62 = vld [vmem:[#allocation7 + $0x620] sm:$0xff] }
 0x150   :  { %1657 = vrcp.f32 %v332_v12  ;;  %v1515_v12 = vpack.c.bf16 %v513_v5, %v509_v4  ;;  %v540_v3 = vld [vmem:[#allocation7 + $0x610] sm:$0xff]  ;;  %v547_v5 = vld [vmem:[#allocation7 + $0x648] sm:$0xff] }
 0x151   :  { %1659 = vrcp.f32 %v333_v17  ;;  %v521_v17 = vld [vmem:[#allocation7 + $0x578] sm:$0xff]  ;;  %v544_v4 = vld [vmem:[#allocation7 + $0x630] sm:$0xff] }
 0x158   :  { %v1654_v16 = vpop.eup %1653 }
 0x159   :  { %v1656_v21 = vpop.eup %1655  ;;  %v342_v27 = vmul.f32 %v1654_v16, %v238_v49  ;;  %v501_v49 = vld [vmem:[#allocation7 + $0x4d8] sm:$0xff] }
 0x15a   :  { %v343_v22 = vmul.f32 %v1656_v21, %v240_v51  ;;  %v1381_v51 = vpack.c.bf16 %v494_v39, %v490_v38  ;;  %v1658_v57 = vpop.eup %1657  ;;  %v1511_v59 = vpack.c.bf16 %v505_v50, %v501_v49  ;;  %v517_v16 = vld [vmem:[#allocation7 + $0x558] sm:$0xff]  ;;  %v535_v38 = vld [vmem:[#allocation7 + $0x5e8] sm:$0xff]  ;;  %v532_v50 = vld [vmem:[#allocation7 + $0x5d0] sm:$0xff] }
 0x15b   :  { %v1660_v1 = vpop.eup %1659  ;;  %v1917_v2 = vmul.f32 %v1658_v57, %v1910_v61  ;;  %v519_v61 = vld [vmem:[#allocation7 + $0x568] sm:$0xff]  ;;  %v533_v39 = vld [vmem:[#allocation7 + $0x5d8] sm:$0xff] }
 0x15c   :  { %688 = vmatprep.mubr.f32.mxu0 %v343_v22  ;;  %830 = vmatprep.mubr.f32.mxu1 %v343_v22  ;;  %v345_v6 = vmul.f32 %v1660_v1, %v1912_v63  ;;  %v1389_v63 = vpack.c.bf16 %v510_v10, %v506_v9  ;;  %v1391_v21 = vpack.c.bf16 %v519_v61, %v515_v15  ;;  %v545_v57 = vld [vmem:[#allocation7 + $0x638] sm:$0xff]  ;;  %v548_v15 = vld [vmem:[#allocation7 + $0x650] sm:$0xff] }
 0x15d   :  { %689 = vmatmul.mubr.f32.vlgmr.msra.gmra.mrb[2].mxu0 %v342_v27  ;;  %831 = vmatmul.mubr.f32.vlgmr.msra.gmra.mrb[2].mxu1 %v342_v27  ;;  %v1519_v22 = vpack.c.bf16 %v521_v17, %v517_v16  ;;  %v525_v27 = vld [vmem:[#allocation7 + $0x598] sm:$0xff]  ;;  %v1531_v1 = vpack.c.bf16 %v545_v57, %v541_v55  ;;  %v1405_v9 = vpack.c.bf16 %v542_v62, %v538_v60  ;;  %v552_v61 = vld [vmem:[#allocation7 + $0x670] sm:$0xff]  ;;  %v555_v16 = vld [vmem:[#allocation7 + $0x688] sm:$0xff] }
 0x15e   :  { %1374 = vmatpush1.bf16.msra.mxu0 %v1373_v23  ;;  %1502 = vmatpush1.bf16.msra.mxu1 %v1501_v24  ;;  %v516_v23 = vld [vmem:[#allocation7 + $0x550] sm:$0xff]  ;;  %v1533_v10 = vpack.c.bf16 %v544_v4, %v540_v3  ;;  %v559_v17 = vld [vmem:[#allocation7 + $0x6a8] sm:$0xff] }
 0x15f   :  { %1376 = vmatprep.subr.bf16.mxu0 %v1375_v28  ;;  %1504 = vmatprep.subr.bf16.mxu1 %v1503_v29  ;;  %v520_v24 = vld [vmem:[#allocation7 + $0x570] sm:$0xff]  ;;  %v529_v28 = vld [vmem:[#allocation7 + $0x5b8] sm:$0xff]  ;;  %v1393_v29 = vpack.c.bf16 %v518_v20, %v514_v19  ;;  %v1537_v20 = vpack.c.bf16 %v552_v61, %v548_v15  ;;  %v579_v55 = vld [vmem:[#allocation7 + $0x748] sm:$0xff] }
 0x160   :  { %759 = vmatprep.mubr.f32.mxu0 %v345_v6  ;;  %901 = vmatprep.mubr.f32.mxu1 %v345_v6  ;;  %v1521_v30 = vpack.c.bf16 %v520_v24, %v516_v23  ;;  %v1523_v34 = vpack.c.bf16 %v529_v28, %v525_v27  ;;  %v551_v6 = vld [vmem:[#allocation7 + $0x668] sm:$0xff]  ;;  %v1411_v23 = vpack.c.bf16 %v559_v17, %v555_v16  ;;  %v588_v16 = vld [vmem:[#allocation7 + $0x790] sm:$0xff] }
 0x161   :  { %v1407_v13 = vpack.c.bf16 %v551_v6, %v547_v5  ;;  %v563_v27 = vld [vmem:[#allocation7 + $0x6c8] sm:$0xff]  ;;  %v580_v5 = vld [vmem:[#allocation7 + $0x750] sm:$0xff] }
 0x162   :  { %1378 = vmatpush1.bf16.msra.mxu0 %v1377_v36  ;;  %1506 = vmatpush1.bf16.msra.mxu1 %v1505_v37  ;;  %v528_v36 = vld [vmem:[#allocation7 + $0x5b0] sm:$0xff]  ;;  %v531_v37 = vld [vmem:[#allocation7 + $0x5c8] sm:$0xff] }
 0x163   :  { %1380 = vmatprep.subr.bf16.mxu0 %v1379_v40  ;;  %1508 = vmatprep.subr.bf16.mxu1 %v1507_v43  ;;  %v537_v40 = vld [vmem:[#allocation7 + $0x5f8] sm:$0xff]  ;;  %v1397_v43 = vpack.c.bf16 %v526_v32, %v522_v31  ;;  %v1525_v45 = vpack.c.bf16 %v528_v36, %v524_v35  ;;  %v1399_v48 = vpack.c.bf16 %v535_v38, %v531_v37  ;;  %v567_v28 = vld [vmem:[#allocation7 + $0x6e8] sm:$0xff]  ;;  %v564_v37 = vld [vmem:[#allocation7 + $0x6d0] sm:$0xff] }
 0x164   :  { %v1527_v49 = vpack.c.bf16 %v537_v40, %v533_v39  ;;  %v1541_v32 = vpack.c.bf16 %v560_v26, %v556_v25  ;;  %v1415_v35 = vpack.c.bf16 %v567_v28, %v563_v27  ;;  %v568_v38 = vld [vmem:[#allocation7 + $0x6f0] sm:$0xff]  ;;  %v571_v39 = vld [vmem:[#allocation7 + $0x708] sm:$0xff]  ;;  %v598_v26 = vld [vmem:[#allocation7 + $0x7e0] sm:$0xff] }
 0x165   :  { %v575_v40 = vld [vmem:[#allocation7 + $0x728] sm:$0xff]  ;;  %v584_v6 = vld [vmem:[#allocation7 + $0x770] sm:$0xff] }
 0x166   :  { %1382 = vmatpush1.bf16.msra.mxu0 %v1381_v51  ;;  %1510 = vmatpush1.bf16.msra.mxu1 %v1509_v52  ;;  %v536_v51 = vld [vmem:[#allocation7 + $0x5f0] sm:$0xff]  ;;  %v539_v52 = vld [vmem:[#allocation7 + $0x608] sm:$0xff] }
 0x167   :  { %1384 = vmatprep.subr.bf16.mxu0 %v1383_v58  ;;  %1512 = vmatprep.subr.bf16.mxu1 %v1511_v59  ;;  %v1401_v58 = vpack.c.bf16 %v534_v47, %v530_v46  ;;  %v1529_v59 = vpack.c.bf16 %v536_v51, %v532_v50  ;;  %v1403_v0 = vpack.c.bf16 %v543_v53, %v539_v52  ;;  %v572_v52 = vld [vmem:[#allocation7 + $0x710] sm:$0xff]  ;;  %v583_v57 = vld [vmem:[#allocation7 + $0x768] sm:$0xff] }
 0x168   :  { %v1545_v47 = vpack.c.bf16 %v568_v38, %v564_v37  ;;  %v1419_v50 = vpack.c.bf16 %v575_v40, %v571_v39  ;;  %v576_v53 = vld [vmem:[#allocation7 + $0x730] sm:$0xff]  ;;  %v1423_v3 = vpack.c.bf16 %v583_v57, %v579_v55  ;;  %v942_v37 = vld [vmem:[#allocation9 + $0x8] sm:$0xff]  ;;  %v973_v40 = vld [vmem:[#allocation9 + $0x100] sm:$0xff] }
 0x169   :  { %v1549_v62 = vpack.c.bf16 %v576_v53, %v572_v52  ;;  %v592_v17 = vld [vmem:[#allocation7 + $0x7b0] sm:$0xff]  ;;  %v976_v57 = vld [vmem:[#allocation9 + $0x118] sm:$0xff] }
 0x16a   :  { %1386 = vmatpush1.bf16.msra.mxu0 %v1385_v7  ;;  %1514 = vmatpush1.bf16.msra.mxu1 %v1513_v8  ;;  %v549_v7 = vld [vmem:[#allocation7 + $0x658] sm:$0xff]  ;;  %v596_v27 = vld [vmem:[#allocation7 + $0x7d0] sm:$0xff] }
 0x16b   :  { %1388 = vmatprep.subr.bf16.mxu0 %v1387_v11  ;;  %1516 = vmatprep.subr.bf16.mxu1 %v1515_v12  ;;  %v553_v8 = vld [vmem:[#allocation7 + $0x678] sm:$0xff]  ;;  %v546_v11 = vld [vmem:[#allocation7 + $0x640] sm:$0xff]  ;;  %v600_v28 = vld [vmem:[#allocation7 + $0x7f0] sm:$0xff] }
 0x16c   :  { %v550_v12 = vld [vmem:[#allocation7 + $0x660] sm:$0xff]  ;;  %v1535_v14 = vpack.c.bf16 %v553_v8, %v549_v7  ;;  %v587_v7 = vld [vmem:[#allocation7 + $0x788] sm:$0xff]  ;;  %v975_v55 = vld [vmem:[#allocation9 + $0x110] sm:$0xff] }
 0x16d   :  { %v1409_v19 = vpack.c.bf16 %v550_v12, %v546_v11  ;;  %v591_v8 = vld [vmem:[#allocation7 + $0x7a8] sm:$0xff]  ;;  %v1553_v12 = vpack.c.bf16 %v584_v6, %v580_v5 }
 0x16e   :  { %1390 = vmatpush1.bf16.msra.mxu0 %v1389_v63  ;;  %1518 = vmatpush1.bf16.msra.mxu1 %v1517_v18  ;;  %v557_v63 = vld [vmem:[#allocation7 + $0x698] sm:$0xff]  ;;  %v1427_v15 = vpack.c.bf16 %v591_v8, %v587_v7  ;;  %v977_v7 = vld [vmem:[#allocation9 + $0x120] sm:$0xff]  ;;  %v978_v8 = vld [vmem:[#allocation9 + $0x128] sm:$0xff] }
 0x16f   :  { %1392 = vmatprep.subr.bf16.mxu0 %v1391_v21  ;;  %1520 = vmatprep.subr.bf16.mxu1 %v1519_v22  ;;  %v561_v18 = vld [vmem:[#allocation7 + $0x6b8] sm:$0xff]  ;;  %v554_v21 = vld [vmem:[#allocation7 + $0x680] sm:$0xff] }
 0x170   :  { %v558_v22 = vld [vmem:[#allocation7 + $0x6a0] sm:$0xff]  ;;  %v1539_v24 = vpack.c.bf16 %v561_v18, %v557_v63  ;;  %v595_v63 = vld [vmem:[#allocation7 + $0x7c8] sm:$0xff] }
 0x171   :  { %v1413_v31 = vpack.c.bf16 %v558_v22, %v554_v21  ;;  %v599_v18 = vld [vmem:[#allocation7 + $0x7e8] sm:$0xff]  ;;  %v1557_v22 = vpack.c.bf16 %v592_v17, %v588_v16 }
 0x172   :  { %1394 = vmatpush1.bf16.msra.mxu0 %v1393_v29  ;;  %1522 = vmatpush1.bf16.msra.mxu1 %v1521_v30  ;;  %v565_v29 = vld [vmem:[#allocation7 + $0x6d8] sm:$0xff] }
 0x173   :  { %1396 = vmatprep.subr.bf16.mxu0 %v1395_v33  ;;  %1524 = vmatprep.subr.bf16.mxu1 %v1523_v34  ;;  %v569_v30 = vld [vmem:[#allocation7 + $0x6f8] sm:$0xff]  ;;  %v562_v33 = vld [vmem:[#allocation7 + $0x6c0] sm:$0xff] }
 0x174   :  { %v566_v34 = vld [vmem:[#allocation7 + $0x6e0] sm:$0xff]  ;;  %v1543_v36 = vpack.c.bf16 %v569_v30, %v565_v29  ;;  %v1561_v30 = vpack.c.bf16 %v600_v28, %v596_v27 }
 0x175   :  { %v1417_v46 = vpack.c.bf16 %v566_v34, %v562_v33  ;;  %v989_v33 = vld [vmem:[#allocation9 + $0x180] sm:$0xff] }
 0x176   :  { %1398 = vmatpush1.bf16.msra.mxu0 %v1397_v43  ;;  %1526 = vmatpush1.bf16.msra.mxu1 %v1525_v45  ;;  %v573_v43 = vld [vmem:[#allocation7 + $0x718] sm:$0xff] }
 0x177   :  { %1400 = vmatprep.subr.bf16.mxu0 %v1399_v48  ;;  %1528 = vmatprep.subr.bf16.mxu1 %v1527_v49  ;;  %v577_v45 = vld [vmem:[#allocation7 + $0x738] sm:$0xff]  ;;  %v570_v48 = vld [vmem:[#allocation7 + $0x700] sm:$0xff] }
 0x178   :  { %v574_v49 = vld [vmem:[#allocation7 + $0x720] sm:$0xff]  ;;  %v1547_v51 = vpack.c.bf16 %v577_v45, %v573_v43  ;;  %v974_v43 = vld [vmem:[#allocation9 + $0x108] sm:$0xff] }
 0x179   :  { %v1421_v60 = vpack.c.bf16 %v574_v49, %v570_v48  ;;  %v1597_v45 = vpack.c.bf16 %v974_v43, %v973_v40  ;;  %v991_v48 = vld [vmem:[#allocation9 + $0x190] sm:$0xff]  ;;  %v992_v49 = vld [vmem:[#allocation9 + $0x198] sm:$0xff] }
 0x17a   :  { %1402 = vmatpush1.bf16.msra.mxu0 %v1401_v58  ;;  %1530 = vmatpush1.bf16.msra.mxu1 %v1529_v59  ;;  %v581_v58 = vld [vmem:[#allocation7 + $0x758] sm:$0xff]  ;;  %v1599_v52 = vpack.c.bf16 %v992_v49, %v991_v48  ;;  %v983_v43 = vld [vmem:[#allocation9 + $0x150] sm:$0xff]  ;;  %v970_v48 = vld [vmem:[#allocation9 + $0xe8] sm:$0xff] }
 0x17b   :  { %1404 = vmatprep.subr.bf16.mxu0 %v1403_v0  ;;  %1532 = vmatprep.subr.bf16.mxu1 %v1531_v1  ;;  %v585_v59 = vld [vmem:[#allocation7 + $0x778] sm:$0xff]  ;;  %v578_v0 = vld [vmem:[#allocation7 + $0x740] sm:$0xff] }
 0x17c   :  { %v582_v1 = vld [vmem:[#allocation7 + $0x760] sm:$0xff]  ;;  %v1551_v4 = vpack.c.bf16 %v585_v59, %v581_v58  ;;  %v1601_v58 = vpack.c.bf16 %v976_v57, %v975_v55 }
 0x17d   :  { %v1425_v11 = vpack.c.bf16 %v582_v1, %v578_v0  ;;  %v961_v59 = vld [vmem:[#allocation9 + $0xa0] sm:$0xff]  ;;  %v994_v1 = vld [vmem:[#allocation9 + $0x1a8] sm:$0xff] }
 0x17e   :  { %1406 = vmatpush1.bf16.msra.mxu0 %v1405_v9  ;;  %1534 = vmatpush1.bf16.msra.mxu1 %v1533_v10  ;;  %v589_v9 = vld [vmem:[#allocation7 + $0x798] sm:$0xff]  ;;  %v985_v57 = vld [vmem:[#allocation9 + $0x160] sm:$0xff] }
 0x17f   :  { %1408 = vmatprep.subr.bf16.mxu0 %v1407_v13  ;;  %1536 = vmatprep.subr.bf16.mxu1 %v1535_v14  ;;  %v593_v10 = vld [vmem:[#allocation7 + $0x7b8] sm:$0xff]  ;;  %v586_v13 = vld [vmem:[#allocation7 + $0x780] sm:$0xff] }
 0x180   :  { %v590_v14 = vld [vmem:[#allocation7 + $0x7a0] sm:$0xff]  ;;  %v1555_v61 = vpack.c.bf16 %v593_v10, %v589_v9  ;;  %v1605_v9 = vpack.c.bf16 %v978_v8, %v977_v7  ;;  %v963_v10 = vld [vmem:[#allocation9 + $0xb0] sm:$0xff] }
 0x181   :  { %v1429_v21 = vpack.c.bf16 %v590_v14, %v586_v13  ;;  %v996_v14 = vld [vmem:[#allocation9 + $0x1b8] sm:$0xff]  ;;  %v987_v8 = vld [vmem:[#allocation9 + $0x170] sm:$0xff] }
 0x182   :  { %1410 = vmatpush1.bf16.msra.mxu0 %v1409_v19  ;;  %1538 = vmatpush1.bf16.msra.mxu1 %v1537_v20  ;;  %v597_v19 = vld [vmem:[#allocation7 + $0x7d8] sm:$0xff] }
 0x183   :  { %1412 = vmatprep.subr.bf16.mxu0 %v1411_v23  ;;  %1540 = vmatprep.subr.bf16.mxu1 %v1539_v24  ;;  %v601_v20 = vld [vmem:[#allocation7 + $0x7f8] sm:$0xff]  ;;  %v594_v23 = vld [vmem:[#allocation7 + $0x7c0] sm:$0xff]  ;;  %v1431_v24 = vpack.c.bf16 %v599_v18, %v595_v63  ;;  %v979_v63 = vld [vmem:[#allocation9 + $0x130] sm:$0xff] }
 0x184   :  { %v1559_v25 = vpack.c.bf16 %v601_v20, %v597_v19  ;;  %v1433_v29 = vpack.c.bf16 %v598_v26, %v594_v23  ;;  %v980_v18 = vld [vmem:[#allocation9 + $0x138] sm:$0xff]  ;;  %v965_v20 = vld [vmem:[#allocation9 + $0xc0] sm:$0xff]  ;;  %v950_v26 = vld [vmem:[#allocation9 + $0x48] sm:$0xff] }
 0x185   :  { %v1609_v19 = vpack.c.bf16 %v980_v18, %v979_v63 }
 0x186   :  { %1414 = vmatpush1.bf16.msra.mxu0 %v1413_v31  ;;  %1542 = vmatpush1.bf16.msra.mxu1 %v1541_v32  ;;  %v957_v31 = vld [vmem:[#allocation9 + $0x80] sm:$0xff]  ;;  %v958_v32 = vld [vmem:[#allocation9 + $0x88] sm:$0xff] }
 0x187   :  { %1416 = vmatprep.subr.bf16.mxu0 %v1415_v35  ;;  %1544 = vmatprep.subr.bf16.mxu1 %v1543_v36  ;;  %v1563_v34 = vpack.c.bf16 %v958_v32, %v957_v31  ;;  %v990_v35 = vld [vmem:[#allocation9 + $0x188] sm:$0xff]  ;;  %v941_v36 = vld [vmem:[#allocation9] sm:$0xff]  ;;  %v967_v32 = vld [vmem:[#allocation9 + $0xd0] sm:$0xff] }
 0x188   :  { %v1595_v38 = vpack.c.bf16 %v990_v35, %v989_v33  ;;  %v1565_v39 = vpack.c.bf16 %v942_v37, %v941_v36  ;;  %v968_v33 = vld [vmem:[#allocation9 + $0xd8] sm:$0xff]  ;;  %v951_v37 = vld [vmem:[#allocation9 + $0x50] sm:$0xff] }
 0x189   :  { %v1583_v35 = vpack.c.bf16 %v968_v33, %v967_v32  ;;  %v1000_v36 = vld [vmem:[#allocation9 + $0x1d8] sm:$0xff] }
 0x18a   :  { %1418 = vmatpush1.bf16.msra.mxu0 %v1417_v46  ;;  %1546 = vmatpush1.bf16.msra.mxu1 %v1545_v47  ;;  %v959_v46 = vld [vmem:[#allocation9 + $0x90] sm:$0xff]  ;;  %v960_v47 = vld [vmem:[#allocation9 + $0x98] sm:$0xff] }
 0x18b   :  { %1420 = vmatprep.subr.bf16.mxu0 %v1419_v50  ;;  %1548 = vmatprep.subr.bf16.mxu1 %v1547_v51  ;;  %v943_v50 = vld [vmem:[#allocation9 + $0x10] sm:$0xff]  ;;  %v944_v51 = vld [vmem:[#allocation9 + $0x18] sm:$0xff] }
 0x18c   :  { %v1569_v53 = vpack.c.bf16 %v944_v51, %v943_v50  ;;  %v1002_v50 = vld [vmem:[#allocation9 + $0x1e8] sm:$0xff]  ;;  %v953_v51 = vld [vmem:[#allocation9 + $0x60] sm:$0xff] }
 0x18e   :  { %1422 = vmatpush1.bf16.msra.mxu0 %v1421_v60  ;;  %1550 = vmatpush1.bf16.msra.mxu1 %v1549_v62  ;;  %v962_v60 = vld [vmem:[#allocation9 + $0xa8] sm:$0xff]  ;;  %v993_v62 = vld [vmem:[#allocation9 + $0x1a0] sm:$0xff] }
 0x18f   :  { %1424 = vmatprep.subr.bf16.mxu0 %v1423_v3  ;;  %1552 = vmatprep.subr.bf16.mxu1 %v1551_v4  ;;  %v1571_v0 = vpack.c.bf16 %v962_v60, %v961_v59  ;;  %v945_v3 = vld [vmem:[#allocation9 + $0x20] sm:$0xff]  ;;  %v946_v4 = vld [vmem:[#allocation9 + $0x28] sm:$0xff]  ;;  %v1603_v5 = vpack.c.bf16 %v994_v1, %v993_v62  ;;  %v971_v60 = vld [vmem:[#allocation9 + $0xf0] sm:$0xff] }
 0x190   :  { %v1573_v6 = vpack.c.bf16 %v946_v4, %v945_v3  ;;  %v972_v62 = vld [vmem:[#allocation9 + $0xf8] sm:$0xff]  ;;  %v955_v4 = vld [vmem:[#allocation9 + $0x70] sm:$0xff] }
 0x191   :  { %v1591_v1 = vpack.c.bf16 %v972_v62, %v971_v60  ;;  %v1004_v3 = vld [vmem:[#allocation9 + $0x1f8] sm:$0xff] }
 0x192   :  { %1426 = vmatpush1.bf16.msra.mxu0 %v1425_v11  ;;  %1554 = vmatpush1.bf16.msra.mxu1 %v1553_v12  ;;  %v964_v11 = vld [vmem:[#allocation9 + $0xb8] sm:$0xff]  ;;  %v995_v12 = vld [vmem:[#allocation9 + $0x1b0] sm:$0xff] }
 0x193   :  { %1428 = vmatprep.subr.bf16.mxu0 %v1427_v15  ;;  %1556 = vmatprep.subr.bf16.mxu1 %v1555_v61  ;;  %v1575_v13 = vpack.c.bf16 %v964_v11, %v963_v10  ;;  %v947_v15 = vld [vmem:[#allocation9 + $0x30] sm:$0xff]  ;;  %v948_v61 = vld [vmem:[#allocation9 + $0x38] sm:$0xff]  ;;  %v1607_v16 = vpack.c.bf16 %v996_v14, %v995_v12 }
 0x194   :  { %v1577_v17 = vpack.c.bf16 %v948_v61, %v947_v15  ;;  %v602_v11 = vld [vmem:[%s1953_s5] sm:$0xf] }
 0x195   :  { %v607_v12 = vrot.slane %v602_v11, %v153_v42  ;;  %v611_v14 = vrot.slane %v602_v11, %v157_v44  ;;  %v619_v15 = vrot.slane %v602_v11, %v165_v56 }
 0x196   :  { %1430 = vmatpush1.bf16.msra.mxu0 %v1429_v21  ;;  %1558 = vmatpush1.bf16.msra.mxu1 %v1557_v22  ;;  %v966_v21 = vld [vmem:[#allocation9 + $0xc8] sm:$0xff]  ;;  %v997_v22 = vld [vmem:[#allocation9 + $0x1c0] sm:$0xff] }
 0x197   :  { %1432 = vmatprep.subr.bf16.mxu0 %v1431_v24  ;;  %1560 = vmatprep.subr.bf16.mxu1 %v1559_v25  ;;  %v1579_v23 = vpack.c.bf16 %v966_v21, %v965_v20  ;;  %v998_v24 = vld [vmem:[#allocation9 + $0x1c8] sm:$0xff]  ;;  %v949_v25 = vld [vmem:[#allocation9 + $0x40] sm:$0xff] }
 0x198   :  { %v1611_v27 = vpack.c.bf16 %v998_v24, %v997_v22  ;;  %v1581_v28 = vpack.c.bf16 %v950_v26, %v949_v25 }
 0x19a   :  { %1434 = vmatpush1.bf16.msra.mxu0 %v1433_v29  ;;  %1562 = vmatpush1.bf16.msra.mxu1 %v1561_v30  ;;  %v981_v29 = vld [vmem:[#allocation9 + $0x140] sm:$0xff]  ;;  %v982_v30 = vld [vmem:[#allocation9 + $0x148] sm:$0xff] }
 0x19b   :  { %1564 = vmatprep.subr.bf16.mxu0 %v1563_v34  ;;  %1596 = vmatprep.subr.bf16.mxu1 %v1595_v38  ;;  %v1613_v31 = vpack.c.bf16 %v982_v30, %v981_v29  ;;  %v999_v34 = vld [vmem:[#allocation9 + $0x1d0] sm:$0xff]  ;;  %v952_v38 = vld [vmem:[#allocation9 + $0x58] sm:$0xff] }
 0x19c   :  { %v1585_v40 = vpack.c.bf16 %v952_v38, %v951_v37 }
 0x19d   :  { %760 = vmatmul.mubr.f32.vlgmr.msra.gmra.mrb[2].mxu0 %v1917_v2  ;;  %902 = vmatmul.mubr.f32.vlgmr.msra.gmra.mrb[2].mxu1 %v1917_v2  ;;  %v1567_v2 = vpack.c.bf16 %v960_v47, %v959_v46  ;;  %v969_v47 = vld [vmem:[#allocation9 + $0xe0] sm:$0xff] }
 0x19e   :  { %1566 = vmatpush3.bf16.msra.mxu0 %v1565_v39  ;;  %1598 = vmatpush3.bf16.msra.mxu1 %v1597_v45  ;;  %v1615_v39 = vpack.c.bf16 %v1000_v36, %v999_v34  ;;  %v984_v45 = vld [vmem:[#allocation9 + $0x158] sm:$0xff]  ;;  %v1587_v49 = vpack.c.bf16 %v970_v48, %v969_v47  ;;  %v1005_v47 = vld [vmem:[%s1955_s7] sm:$0x1] }
 0x19f   :  { %1568 = vmatprep.subr.bf16.mxu0 %v1567_v2  ;;  %1600 = vmatprep.subr.bf16.mxu1 %v1599_v52  ;;  %v1617_v46 = vpack.c.bf16 %v984_v45, %v983_v43  ;;  %v1001_v2 = vld [vmem:[#allocation9 + $0x1e0] sm:$0xff]  ;;  %v954_v52 = vld [vmem:[#allocation9 + $0x68] sm:$0xff] }
 0x1a0   :  { %v1589_v55 = vpack.c.bf16 %v954_v52, %v953_v51 }
 0x1a2   :  { %1570 = vmatpush3.bf16.msra.mxu0 %v1569_v53  ;;  %1602 = vmatpush3.bf16.msra.mxu1 %v1601_v58  ;;  %v1619_v53 = vpack.c.bf16 %v1002_v50, %v1001_v2  ;;  %v986_v58 = vld [vmem:[#allocation9 + $0x168] sm:$0xff] }
 0x1a3   :  { %1572 = vmatprep.subr.bf16.mxu0 %v1571_v0  ;;  %1604 = vmatprep.subr.bf16.mxu1 %v1603_v5  ;;  %v1621_v59 = vpack.c.bf16 %v986_v58, %v985_v57  ;;  %v1003_v0 = vld [vmem:[#allocation9 + $0x1f0] sm:$0xff]  ;;  %v956_v5 = vld [vmem:[#allocation9 + $0x78] sm:$0xff] }
 0x1a4   :  { %v1593_v7 = vpack.c.bf16 %v956_v5, %v955_v4 }
 0x1a6   :  { %1574 = vmatpush3.bf16.msra.mxu0 %v1573_v6  ;;  %1606 = vmatpush3.bf16.msra.mxu1 %v1605_v9  ;;  %v1623_v6 = vpack.c.bf16 %v1004_v3, %v1003_v0  ;;  %v988_v9 = vld [vmem:[#allocation9 + $0x178] sm:$0xff] }
 0x1a7   :  { %1576 = vmatprep.subr.bf16.mxu0 %v1575_v13  ;;  %1608 = vmatprep.subr.bf16.mxu1 %v1607_v16  ;;  %v1625_v10 = vpack.c.bf16 %v988_v9, %v987_v8  ;;  %v615_v13 = vrot.slane %v602_v11, %v161_v54  ;;  %v908_v16 = vstv %s1164_s3 }
 0x1aa   :  { %1578 = vmatpush3.bf16.msra.mxu0 %v1577_v17  ;;  %1610 = vmatpush3.bf16.msra.mxu1 %v1609_v19 }
 0x1ab   :  { %1580 = vmatprep.subr.bf16.mxu0 %v1579_v23  ;;  %1612 = vmatprep.subr.bf16.mxu1 %v1611_v27 }
 0x1ae   :  { %1582 = vmatpush3.bf16.msra.mxu0 %v1581_v28  ;;  %1614 = vmatpush3.bf16.msra.mxu1 %v1613_v31 }
 0x1af   :  { %1584 = vmatprep.subr.bf16.mxu0 %v1583_v35  ;;  %1616 = vmatprep.subr.bf16.mxu1 %v1615_v39 }
 0x1b2   :  { %1586 = vmatpush3.bf16.msra.mxu0 %v1585_v40  ;;  %1618 = vmatpush3.bf16.msra.mxu1 %v1617_v46 }
 0x1b3   :  { %1588 = vmatprep.subr.bf16.mxu0 %v1587_v49  ;;  %1620 = vmatprep.subr.bf16.mxu1 %v1619_v53 }
 0x1b6   :  { %1590 = vmatpush3.bf16.msra.mxu0 %v1589_v55  ;;  %1622 = vmatpush3.bf16.msra.mxu1 %v1621_v59 }
 0x1b7   :  { %1592 = vmatprep.subr.bf16.mxu0 %v1591_v1  ;;  %1624 = vmatprep.subr.bf16.mxu1 %v1623_v6 }
 0x1ba   :  { %1594 = vmatpush3.bf16.msra.mxu0 %v1593_v7  ;;  %1626 = vmatpush3.bf16.msra.mxu1 %v1625_v10 }
 0x270   :  { %v761_v61 = vpop.f32.mrb[2].mxu0  ;;  %v903_v17 = vpop.f32.mrb[2].mxu1 }
 0x271   :  { %v1627_v63 = vadd.f32 %v761_v61, %v607_v12  ;;  %v1629_v18 = vadd.f32 %v903_v17, %v615_v13  ;;  %v763_v19 = vpop.f32.mrb[3].mxu0  ;;  %v905_v20 = vpop.f32.mrb[3].mxu1 }
 0x272   :  { %v1628_v21 = vadd.f32 %v763_v19, %v611_v14  ;;  %v1630_v22 = vadd.f32 %v905_v20, %v619_v15 }
 0x273   :  { %v909_v23 = vmul.f32 %v1627_v63, %v908_v16  ;;  %v911_v42 = vmul.f32 %v1629_v18, %v908_v16 }
 0x274   :  { %v910_v24 = vmul.f32 %v1628_v21, %v908_v16  ;;  %v912_v25 = vmul.f32 %v1630_v22, %v908_v16 }
 0x275   :  { %v1169_v54 = vmul.f32 -1.442695, %v909_v23  ;;  %v1171_v26 = vmul.f32 -1.442695, %v911_v42 }
 0x276   :  { %v1170_v27 = vmul.f32 -1.442695, %v910_v24  ;;  %v1172_v44 = vmul.f32 -1.442695, %v912_v25 }
 0x277   :  { %1661 = vpow2.f32 %v1169_v54 }
 0x278   :  { %1663 = vpow2.f32 %v1171_v26 }
 0x279   :  { %1665 = vpow2.f32 %v1170_v27 }
 0x27a   :  { %1667 = vpow2.f32 %v1172_v44 }
 0x281   :  { %v1662_v41 = vpop.eup %1661 }
 0x282   :  { %v1664_v56 = vpop.eup %1663  ;;  %v925_v28 = vadd.f32 1.0, %v1662_v41 }
 0x283   :  { %v1666_v29 = vpop.eup %1665  ;;  %v927_v30 = vadd.f32 1.0, %v1664_v56 }
 0x284   :  { %v1668_v31 = vpop.eup %1667  ;;  %1669 = vrcp.f32 %v925_v28  ;;  %v926_v32 = vadd.f32 1.0, %v1666_v29 }
 0x285   :  { %1671 = vrcp.f32 %v927_v30  ;;  %v928_v33 = vadd.f32 1.0, %v1668_v31 }
 0x286   :  { %1673 = vrcp.f32 %v926_v32 }
 0x287   :  { %1675 = vrcp.f32 %v928_v33 }
 0x28e   :  { %v1670_v34 = vpop.eup %1669 }
 0x28f   :  { %v1672_v35 = vpop.eup %1671  ;;  %v937_v39 = vmul.f32 %v1670_v34, %v1627_v63 }
 0x290   :  { %v1674_v36 = vpop.eup %1673  ;;  %v939_v43 = vmul.f32 %v1672_v35, %v1629_v18 }
 0x291   :  { %v1676_v37 = vpop.eup %1675  ;;  %v938_v38 = vmul.f32 %v1674_v36, %v1628_v21 }
 0x292   :  { %v940_v40 = vmul.f32 %v1676_v37, %v1630_v22 }
 0x293   :  { %1070 = vmatprep.mubr.f32.mxu0 %v938_v38 }
 0x294   :  { %1140 = vmatprep.mubr.f32.mxu1 %v940_v40  ;;  %1071 = vmatmul.mubr.f32.vlgmr.msra.gmra.mrb[4].mxu0 %v937_v39 }
 0x295   :  { %1141 = vmatmul.mubr.f32.vlgmr.msra.gmra.mrb[4].mxu1 %v939_v43 }
 0x367   :  { %v1205_v45 = vpop.f32.mrb[4].mxu0 }
 0x368   :  { %v1240_v46 = vpop.f32.mrb[4].mxu1  ;;  %v1206_v48 = vpop.f32.mrb[5].mxu0 }
 0x369   :  { %v1207_v2 = vadd.f32 %v1206_v48, %v1205_v45  ;;  %v1241_v49 = vpop.f32.mrb[5].mxu1 }
 0x36a   :  { %v1242_v50 = vadd.f32 %v1241_v49, %v1240_v46 }
 0x36b   :  { %v1073_v51 = vadd.f32 %v1207_v2, %v1005_v47 }
 0x36d   :  { %v1143_v52 = vadd.f32 %v1242_v50, %v1073_v51 }
 0x36f   :  { %1146 = vst [vmem:[#allocation10] sm:$0x1] %v1143_v52 }
 0x370   :  { %1764 = shalt.err (!%p1761_p3)
}
 0x371   :  { %s1765_s20 = scalar_lea.hbm %s1956_s8, 16 }
 0x372   :  { %p1766_p4 = scmp.ne.s32.totalorder %s1956_s8, %s1765_s20  ;;  %p1769_p5 = scmp.lt.u32.totalorder %s1765_s20, %s1956_s8 }
 0x374   :  { %p1771_p6 = pnand %p1769_p5, %p1766_p4 }
 0x376   :  { %1774 = shalt.err (!%p1771_p6)
}
 0x377   :  { %1156 = dma.vmem_to_hbm [thread:$0]  %s1154_s15, 16, %s1956_s8, [#allocation4]  }
 0x378   :  { %1781 = dma.done.wait [#allocation4], 16  }
 0x379   :  { %1782 = vsyncadd [#allocation4], 4294967280 }
 0x37a   :  { %1160 = vsyncpa [#allocation3], 1 }
 0x37b   :  { %1161 = vsyncpa [#allocation8], 1 }
 0x37c   :  { %1162 = vsyncpa [#allocation4], 1 }
 0x37d   :  { %1163 = vsyncpa [#allocation5], 1 }

</bundles_post_ra>
